<compile_context>
chip_gen: v5e
topology: v5e:2x2
jax: 0.10.0
libtpu: 0.0.40
codegen_flags: <defaults>
</compile_context>

<pallas_src>
import functools

import jax
import jax.numpy as jnp
from jax.experimental import pallas as pl
from jax.experimental.pallas import tpu as pltpu


# ------------------------------ Pallas kernel --------------------------------

def _basic_block_kernel(x_ref, w1_ref, b1_ref, w2_ref, b2_ref, *rest,
                        has_proj, stride, Hp, Wp, Ho, Wo):
    """One batch image of the fused residual block.

    x_ref  : (stride*stride*Hp*Wp, Cin) bf16 -- flat "parity planes" of padded x
    w1_ref : (9, Cin,  Cmid) bf16  (BN1 scale folded)
    w2_ref : (9, Cmid, Cout) bf16  (BN2 scale folded)
    ws_ref : (Cin, Cout) bf16      (projection shortcut; absent for identity)
    b1_ref : (1, Cmid) f32 ; b2_ref : (1, Cout) f32 (shortcut bias folded in)
    out_ref: (Ho*Wp, Cout) bf16    (columns >= Wo are junk, dropped by wrapper)
    y1_ref : ((Ho+3)*Wp, Cmid) bf16 VMEM scratch == conv2's zero-padded input slab
    """
    if has_proj:
        ws_ref, out_ref, y1_ref = rest
    else:
        out_ref, y1_ref = rest

    Cmid = w1_ref.shape[-1]
    Cout = w2_ref.shape[-1]
    Ws = Wp                    # slab / compute-grid width (= Wo + 2)
    M = Ho * Ws                # GEMM rows per conv

    # ---- conv1: 9 taps, each one contiguous row-slice of the parity planes ----
    acc1 = jnp.zeros((M, Cmid), jnp.float32)
    for dh in range(3):
        for dw in range(3):
            plane = (dh % stride) * stride + (dw % stride)
            off = plane * Hp * Wp + (dh // stride) * Wp + (dw // stride)
            acc1 = acc1 + jnp.dot(x_ref[pl.ds(off, M), :], w1_ref[dh * 3 + dw],
                                  preferred_element_type=jnp.float32)

    # Bias + ReLU; zero the junk columns (jc >= Wo) so they double as conv2's
    # left/right zero padding inside the slab.
    col = jax.lax.broadcasted_iota(jnp.int32, (M, 1), 0) % Ws
    y1 = jnp.where(col < Wo, jnp.maximum(acc1 + b1_ref[...], 0.0), 0.0)

    # Conv2 padded-input slab: re-zero only the thin top/bottom borders (cheap,
    # every step -> correct under any grid/core partitioning), then ONE
    # contiguous store of the whole conv1 output into the interior.
    y1_ref[pl.ds(0, Ws + 1), :] = jnp.zeros((Ws + 1, Cmid), y1_ref.dtype)
    y1_ref[pl.ds((Ho + 1) * Ws + 1, Ws + 2), :] = jnp.zeros((Ws + 2, Cmid),
                                                            y1_ref.dtype)
    y1_ref[pl.ds(Ws + 1, M), :] = y1.astype(y1_ref.dtype)

    # ---- conv2 (stride 1): 9 taps, contiguous row-slices of the bf16 slab -----
    # TODO(synk): K-stack the 3 dw-taps per dh (K = 3*Cmid) for better MXU K-fill
    # on the 256-wide v6e/v7x arrays.
    acc2 = jnp.zeros((M, Cout), jnp.float32)
    for dh in range(3):
        for dw in range(3):
            acc2 = acc2 + jnp.dot(y1_ref[pl.ds(dh * Ws + dw, M), :],
                                  w2_ref[dh * 3 + dw],
                                  preferred_element_type=jnp.float32)

    # ---- shortcut: tap (1,1) of the planes == x[::stride, ::stride, :] --------
    p_sc = (1 % stride) * stride + (1 % stride)
    off_sc = p_sc * Hp * Wp + (1 // stride) * Wp + (1 // stride)
    x_c = x_ref[pl.ds(off_sc, M), :]
    if has_proj:
        acc2 = acc2 + jnp.dot(x_c, ws_ref[...], preferred_element_type=jnp.float32)
    else:
        acc2 = acc2 + x_c.astype(jnp.float32)     # identity: VPU add, no MXU work

    out_ref[...] = (acc2 + b2_ref[...]).astype(out_ref.dtype)


# ------------------------------- JAX wrapper ----------------------------------

def bn_fold(gamma, beta, mean, var, eps=1e-5):
    scale = gamma / jnp.sqrt(var + eps)
    return scale, beta - mean * scale


def basic_block_final(x_nchw, params, stride):
    """Fused conv1+BN1+ReLU -> conv2+BN2 -> (+ shortcut[+BN]) in one pallas_call."""
    # TODO(synk): BatchNorm is eval-mode only (running stats folded into the conv
    # weights/bias); training-mode batch statistics are not computed.
    assert stride in (1, 2), "BasicBlock kernel supports stride 1 or 2"
    # TODO(synk): NCHW<->NHWC wrapper transposes kept only to preserve the module
    # interface; a full network should keep activations NHWC between blocks.
    x = jnp.transpose(x_nchw, (0, 2, 3, 1))
    N, H, W, Cin = x.shape
    w1, w2 = params["conv1_w"], params["conv2_w"]
    Cmid, Cout = w1.shape[0], w2.shape[0]
    s = stride
    Ho, Wo = (H - 1) // s + 1, (W - 1) // s + 1
    Hp = Ho + (2 // s) + 1            # plane height (+1 slack row for column wrap)
    Wp = Wo + 2                       # plane width == compute width == conv2 slab width
    M = Ho * Wp
    has_proj = (s != 1) or (Cin != Cout)

    # Fold BN scales into the conv weights (f32 math), cast bf16 for the MXU.
    s1, b1 = bn_fold(*params["bn1"])
    s2, b2 = bn_fold(*params["bn2"])
    w1m = (jnp.transpose(w1, (2, 3, 1, 0)).reshape(9, Cin, Cmid) * s1).astype(jnp.bfloat16)
    w2m = (jnp.transpose(w2, (2, 3, 1, 0)).reshape(9, Cmid, Cout) * s2).astype(jnp.bfloat16)
    if has_proj:
        ssc, bsc = bn_fold(*params["bn_sc"])
        wsm = (params["sc_w"].reshape(Cout, Cin).T * ssc).astype(jnp.bfloat16)
        b2 = b2 + bsc                  # fold the shortcut-BN bias into the conv2 bias

    # Stride-parity planes of the zero-padded input, flattened to (rows, Cin):
    # tap (dh, dw) of the stride-s conv becomes ONE contiguous row window.
    xb = x.astype(jnp.bfloat16)
    xpad = jnp.pad(xb, ((0, 0), (1, s * Hp - (H + 1)), (1, s * Wp - (W + 1)), (0, 0)))
    planes = xpad.reshape(N, Hp, s, Wp, s, Cin).transpose(0, 2, 4, 1, 3, 5)
    planes = planes.reshape(N, s * s * Hp * Wp, Cin)
    Rp = s * s * Hp * Wp
    R2 = (Ho + 3) * Wp                # conv2 slab rows: (Ho+2)*Wp padded y1 + slack

    in_specs = [
        pl.BlockSpec((None, Rp, Cin), lambda n: (n, 0, 0)),
        pl.BlockSpec((9, Cin, Cmid), lambda n: (0, 0, 0)),
        pl.BlockSpec((1, Cmid), lambda n: (0, 0)),
        pl.BlockSpec((9, Cmid, Cout), lambda n: (0, 0, 0)),
        pl.BlockSpec((1, Cout), lambda n: (0, 0)),
    ]
    args = [planes, w1m, b1.reshape(1, Cmid).astype(jnp.float32),
            w2m, b2.reshape(1, Cout).astype(jnp.float32)]
    if has_proj:
        in_specs.append(pl.BlockSpec((Cin, Cout), lambda n: (0, 0)))
        args.append(wsm)

    out = pl.pallas_call(
        functools.partial(_basic_block_kernel, has_proj=has_proj, stride=s,
                          Hp=Hp, Wp=Wp, Ho=Ho, Wo=Wo),
        out_shape=jax.ShapeDtypeStruct((N, M, Cout), jnp.bfloat16),
        grid_spec=pltpu.PrefetchScalarGridSpec(
            num_scalar_prefetch=0,
            grid=(N,),
            in_specs=in_specs,
            out_specs=pl.BlockSpec((None, M, Cout), lambda n: (n, 0, 0)),
            scratch_shapes=[pltpu.VMEM((R2, Cmid), jnp.bfloat16)],
        ),
        compiler_params=pltpu.CompilerParams(dimension_semantics=("parallel",)),
    )(*args)

    # Drop the junk (padding) columns, restore NCHW / f32 module interface.
    out = out.reshape(N, Ho, Wp, Cout)[:, :, :Wo, :]
    return jnp.transpose(out, (0, 3, 1, 2)).astype(jnp.float32)


# ---------------------------- plain-JAX reference -----------------------------

def _conv_ref(x_nhwc, w_oihw, stride, padding):
    w = jnp.transpose(w_oihw, (2, 3, 1, 0))                          # HWIO
    return jax.lax.conv_general_dilated(
        x_nhwc, w, window_strides=(stride, stride),
        padding=[(padding, padding)] * 2,
        dimension_numbers=("NHWC", "HWIO", "NHWC"))


def reference(x_nchw, params, stride):
    x = jnp.transpose(x_nchw, (0, 2, 3, 1)).astype(jnp.float32)

    def bn(y, p):
        g, b, m, v = p
        return (y - m) / jnp.sqrt(v + 1e-5) * g + b

    h = jnp.maximum(bn(_conv_ref(x, params["conv1_w"], stride, 1), params["bn1"]), 0.0)
    h = bn(_conv_ref(h, params["conv2_w"], 1, 1), params["bn2"])
    cin, cout = x.shape[-1], params["conv1_w"].shape[0]
    if stride != 1 or cin != cout:
        sc = bn(_conv_ref(x, params["sc_w"], stride, 0), params["bn_sc"])
    else:
        sc = x
    return jnp.transpose(h + sc, (0, 3, 1, 2))


# ----------------------------------- main --------------------------------------

if __name__ == "__main__":
    key = jax.random.PRNGKey(0)
    ks = jax.random.split(key, 8)

    def bn_params(k, c):
        k0, k1, k2, k3 = jax.random.split(k, 4)
        return (1.0 + 0.1 * jax.random.normal(k0, (c,), jnp.float32),   # gamma
                0.1 * jax.random.normal(k1, (c,), jnp.float32),         # beta
                0.1 * jax.random.normal(k2, (c,), jnp.float32),         # run-mean
                1.0 + 0.1 * jax.random.uniform(k3, (c,), jnp.float32))  # run-var

    def make_params(k, cin, cout, proj):
        kk = jax.random.split(k, 6)
        p = {
            "conv1_w": jax.random.normal(kk[0], (cout, cin, 3, 3), jnp.float32) * (9 * cin) ** -0.5,
            "conv2_w": jax.random.normal(kk[1], (cout, cout, 3, 3), jnp.float32) * (9 * cout) ** -0.5,
            "bn1": bn_params(kk[2], cout),
            "bn2": bn_params(kk[3], cout),
        }
        if proj:
            p["sc_w"] = jax.random.normal(kk[4], (cout, cin, 1, 1), jnp.float32) * cin ** -0.5
            p["bn_sc"] = bn_params(kk[5], cout)
        return p

    def check(name, x, params, stride):
        out = jax.block_until_ready(basic_block_final(x, params, stride))
        ref = jax.block_until_ready(reference(x, params, stride))
        assert out.shape == ref.shape, (name, out.shape, ref.shape)
        err = float(jnp.max(jnp.abs(out - ref)))
        # bf16 activations/weights on the MXU (f32 accumulation) vs f32 reference.
        assert jnp.allclose(out, ref, atol=5e-2, rtol=5e-2), (name, err)

    # 1) downsampling block: stride 2, 4 -> 8 channels
    x1 = jax.random.normal(ks[0], (2, 4, 16, 16), jnp.float32)
    check("stride2_proj", x1, make_params(ks[1], 4, 8, True), 2)

    # 2) identity-shortcut block: stride 1, 8 -> 8 channels
    x2 = jax.random.normal(ks[2], (2, 8, 16, 16), jnp.float32)
    check("stride1_identity", x2, make_params(ks[3], 8, 8, False), 1)

    # 3) realistic channel counts: stride 2, 64 -> 128 channels, 32x32 input
    x3 = jax.random.normal(ks[4], (1, 64, 32, 32), jnp.float32)
    check("stride2_proj_64to128", x3, make_params(ks[5], 64, 128, True), 2)

    print("KERNEL_OK")
</pallas_src>

<mosaic_0001>
module attributes {stable_mosaic.version = 11 : i64} {
  func.func @_basic_block_kernel(%arg0: i32, %arg1: memref<1x400x4xbf16, #tpu.memory_space<vmem>>, %arg2: memref<9x4x8xbf16, #tpu.memory_space<vmem>>, %arg3: memref<1x8xf32, #tpu.memory_space<vmem>>, %arg4: memref<9x8x8xbf16, #tpu.memory_space<vmem>>, %arg5: memref<1x8xf32, #tpu.memory_space<vmem>>, %arg6: memref<4x8xbf16, #tpu.memory_space<vmem>>, %arg7: memref<1x80x8xbf16, #tpu.memory_space<vmem>>, %arg8: memref<110x8xbf16, #tpu.memory_space<vmem>>) attributes {dimension_semantics = [#tpu.dimension_semantics<parallel>], iteration_bounds = array<i64: 2>, scalar_prefetch = 0 : i64, scratch_operands = 1 : i64, tpu.core_type = #tpu.core_type<tc>, window_params = [{transform_indices = @transform_0, window_bounds = array<i64: 1, 400, 4>}, {pipeline_mode = #tpu.pipeline_mode<synchronous>, transform_indices = @transform_1, window_bounds = array<i64: 9, 4, 8>}, {pipeline_mode = #tpu.pipeline_mode<synchronous>, transform_indices = @transform_2, window_bounds = array<i64: 1, 8>}, {pipeline_mode = #tpu.pipeline_mode<synchronous>, transform_indices = @transform_3, window_bounds = array<i64: 9, 8, 8>}, {pipeline_mode = #tpu.pipeline_mode<synchronous>, transform_indices = @transform_4, window_bounds = array<i64: 1, 8>}, {pipeline_mode = #tpu.pipeline_mode<synchronous>, transform_indices = @transform_5, window_bounds = array<i64: 4, 8>}, {transform_indices = @transform_6, window_bounds = array<i64: 1, 80, 8>}]} {
    %cst = arith.constant 0.000000e+00 : f32
    %0 = vector.broadcast %cst : f32 to vector<80x8xf32>
    %c0 = arith.constant 0 : index
    %c0_0 = arith.constant 0 : index
    %c0_1 = arith.constant 0 : index
    %1 = vector.load %arg1[%c0, %c0_0, %c0_1] : memref<1x400x4xbf16, #tpu.memory_space<vmem>>, vector<1x80x4xbf16>
    %2 = vector.shape_cast %1 : vector<1x80x4xbf16> to vector<80x4xbf16>
    %c0_2 = arith.constant 0 : index
    %c0_3 = arith.constant 0 : index
    %c0_4 = arith.constant 0 : index
    %3 = vector.load %arg2[%c0_2, %c0_3, %c0_4] : memref<9x4x8xbf16, #tpu.memory_space<vmem>>, vector<1x4x8xbf16>
    %4 = vector.shape_cast %3 : vector<1x4x8xbf16> to vector<4x8xbf16>
    %cst_5 = arith.constant dense<0.000000e+00> : vector<80x8xf32>
    %5 = tpu.matmul %2, %4, %cst_5 {dimension_numbers = #tpu.dot_dimension_numbers<[1], [0], [0], [1], [0, 0, 1, 1], [], []>} : vector<80x4xbf16>, vector<4x8xbf16>, vector<80x8xf32> -> vector<80x8xf32>
    %6 = arith.addf %0, %5 : vector<80x8xf32>
    %c0_6 = arith.constant 0 : index
    %c100 = arith.constant 100 : index
    %c0_7 = arith.constant 0 : index
    %7 = vector.load %arg1[%c0_6, %c100, %c0_7] : memref<1x400x4xbf16, #tpu.memory_space<vmem>>, vector<1x80x4xbf16>
    %8 = vector.shape_cast %7 : vector<1x80x4xbf16> to vector<80x4xbf16>
    %c1 = arith.constant 1 : index
    %c0_8 = arith.constant 0 : index
    %c0_9 = arith.constant 0 : index
    %9 = vector.load %arg2[%c1, %c0_8, %c0_9] : memref<9x4x8xbf16, #tpu.memory_space<vmem>>, vector<1x4x8xbf16>
    %10 = vector.shape_cast %9 : vector<1x4x8xbf16> to vector<4x8xbf16>
    %cst_10 = arith.constant dense<0.000000e+00> : vector<80x8xf32>
    %11 = tpu.matmul %8, %10, %cst_10 {dimension_numbers = #tpu.dot_dimension_numbers<[1], [0], [0], [1], [0, 0, 1, 1], [], []>} : vector<80x4xbf16>, vector<4x8xbf16>, vector<80x8xf32> -> vector<80x8xf32>
    %12 = arith.addf %6, %11 : vector<80x8xf32>
    %c0_11 = arith.constant 0 : index
    %c1_12 = arith.constant 1 : index
    %c0_13 = arith.constant 0 : index
    %13 = vector.load %arg1[%c0_11, %c1_12, %c0_13] : memref<1x400x4xbf16, #tpu.memory_space<vmem>>, vector<1x80x4xbf16>
    %14 = vector.shape_cast %13 : vector<1x80x4xbf16> to vector<80x4xbf16>
    %c2 = arith.constant 2 : index
    %c0_14 = arith.constant 0 : index
    %c0_15 = arith.constant 0 : index
    %15 = vector.load %arg2[%c2, %c0_14, %c0_15] : memref<9x4x8xbf16, #tpu.memory_space<vmem>>, vector<1x4x8xbf16>
    %16 = vector.shape_cast %15 : vector<1x4x8xbf16> to vector<4x8xbf16>
    %cst_16 = arith.constant dense<0.000000e+00> : vector<80x8xf32>
    %17 = tpu.matmul %14, %16, %cst_16 {dimension_numbers = #tpu.dot_dimension_numbers<[1], [0], [0], [1], [0, 0, 1, 1], [], []>} : vector<80x4xbf16>, vector<4x8xbf16>, vector<80x8xf32> -> vector<80x8xf32>
    %18 = arith.addf %12, %17 : vector<80x8xf32>
    %c0_17 = arith.constant 0 : index
    %c200 = arith.constant 200 : index
    %c0_18 = arith.constant 0 : index
    %19 = vector.load %arg1[%c0_17, %c200, %c0_18] : memref<1x400x4xbf16, #tpu.memory_space<vmem>>, vector<1x80x4xbf16>
    %20 = vector.shape_cast %19 : vector<1x80x4xbf16> to vector<80x4xbf16>
    %c3 = arith.constant 3 : index
    %c0_19 = arith.constant 0 : index
    %c0_20 = arith.constant 0 : index
    %21 = vector.load %arg2[%c3, %c0_19, %c0_20] : memref<9x4x8xbf16, #tpu.memory_space<vmem>>, vector<1x4x8xbf16>
    %22 = vector.shape_cast %21 : vector<1x4x8xbf16> to vector<4x8xbf16>
    %cst_21 = arith.constant dense<0.000000e+00> : vector<80x8xf32>
    %23 = tpu.matmul %20, %22, %cst_21 {dimension_numbers = #tpu.dot_dimension_numbers<[1], [0], [0], [1], [0, 0, 1, 1], [], []>} : vector<80x4xbf16>, vector<4x8xbf16>, vector<80x8xf32> -> vector<80x8xf32>
    %24 = arith.addf %18, %23 : vector<80x8xf32>
    %c0_22 = arith.constant 0 : index
    %c300 = arith.constant 300 : index
    %c0_23 = arith.constant 0 : index
    %25 = vector.load %arg1[%c0_22, %c300, %c0_23] : memref<1x400x4xbf16, #tpu.memory_space<vmem>>, vector<1x80x4xbf16>
    %26 = vector.shape_cast %25 : vector<1x80x4xbf16> to vector<80x4xbf16>
    %c4 = arith.constant 4 : index
    %c0_24 = arith.constant 0 : index
    %c0_25 = arith.constant 0 : index
    %27 = vector.load %arg2[%c4, %c0_24, %c0_25] : memref<9x4x8xbf16, #tpu.memory_space<vmem>>, vector<1x4x8xbf16>
    %28 = vector.shape_cast %27 : vector<1x4x8xbf16> to vector<4x8xbf16>
    %cst_26 = arith.constant dense<0.000000e+00> : vector<80x8xf32>
    %29 = tpu.matmul %26, %28, %cst_26 {dimension_numbers = #tpu.dot_dimension_numbers<[1], [0], [0], [1], [0, 0, 1, 1], [], []>} : vector<80x4xbf16>, vector<4x8xbf16>, vector<80x8xf32> -> vector<80x8xf32>
    %30 = arith.addf %24, %29 : vector<80x8xf32>
    %c0_27 = arith.constant 0 : index
    %c201 = arith.constant 201 : index
    %c0_28 = arith.constant 0 : index
    %31 = vector.load %arg1[%c0_27, %c201, %c0_28] : memref<1x400x4xbf16, #tpu.memory_space<vmem>>, vector<1x80x4xbf16>
    %32 = vector.shape_cast %31 : vector<1x80x4xbf16> to vector<80x4xbf16>
    %c5 = arith.constant 5 : index
    %c0_29 = arith.constant 0 : index
    %c0_30 = arith.constant 0 : index
    %33 = vector.load %arg2[%c5, %c0_29, %c0_30] : memref<9x4x8xbf16, #tpu.memory_space<vmem>>, vector<1x4x8xbf16>
    %34 = vector.shape_cast %33 : vector<1x4x8xbf16> to vector<4x8xbf16>
    %cst_31 = arith.constant dense<0.000000e+00> : vector<80x8xf32>
    %35 = tpu.matmul %32, %34, %cst_31 {dimension_numbers = #tpu.dot_dimension_numbers<[1], [0], [0], [1], [0, 0, 1, 1], [], []>} : vector<80x4xbf16>, vector<4x8xbf16>, vector<80x8xf32> -> vector<80x8xf32>
    %36 = arith.addf %30, %35 : vector<80x8xf32>
    %c0_32 = arith.constant 0 : index
    %c10 = arith.constant 10 : index
    %c0_33 = arith.constant 0 : index
    %37 = vector.load %arg1[%c0_32, %c10, %c0_33] : memref<1x400x4xbf16, #tpu.memory_space<vmem>>, vector<1x80x4xbf16>
    %38 = vector.shape_cast %37 : vector<1x80x4xbf16> to vector<80x4xbf16>
    %c6 = arith.constant 6 : index
    %c0_34 = arith.constant 0 : index
    %c0_35 = arith.constant 0 : index
    %39 = vector.load %arg2[%c6, %c0_34, %c0_35] : memref<9x4x8xbf16, #tpu.memory_space<vmem>>, vector<1x4x8xbf16>
    %40 = vector.shape_cast %39 : vector<1x4x8xbf16> to vector<4x8xbf16>
    %cst_36 = arith.constant dense<0.000000e+00> : vector<80x8xf32>
    %41 = tpu.matmul %38, %40, %cst_36 {dimension_numbers = #tpu.dot_dimension_numbers<[1], [0], [0], [1], [0, 0, 1, 1], [], []>} : vector<80x4xbf16>, vector<4x8xbf16>, vector<80x8xf32> -> vector<80x8xf32>
    %42 = arith.addf %36, %41 : vector<80x8xf32>
    %c0_37 = arith.constant 0 : index
    %c110 = arith.constant 110 : index
    %c0_38 = arith.constant 0 : index
    %43 = vector.load %arg1[%c0_37, %c110, %c0_38] : memref<1x400x4xbf16, #tpu.memory_space<vmem>>, vector<1x80x4xbf16>
    %44 = vector.shape_cast %43 : vector<1x80x4xbf16> to vector<80x4xbf16>
    %c7 = arith.constant 7 : index
    %c0_39 = arith.constant 0 : index
    %c0_40 = arith.constant 0 : index
    %45 = vector.load %arg2[%c7, %c0_39, %c0_40] : memref<9x4x8xbf16, #tpu.memory_space<vmem>>, vector<1x4x8xbf16>
    %46 = vector.shape_cast %45 : vector<1x4x8xbf16> to vector<4x8xbf16>
    %cst_41 = arith.constant dense<0.000000e+00> : vector<80x8xf32>
    %47 = tpu.matmul %44, %46, %cst_41 {dimension_numbers = #tpu.dot_dimension_numbers<[1], [0], [0], [1], [0, 0, 1, 1], [], []>} : vector<80x4xbf16>, vector<4x8xbf16>, vector<80x8xf32> -> vector<80x8xf32>
    %48 = arith.addf %42, %47 : vector<80x8xf32>
    %c0_42 = arith.constant 0 : index
    %c11 = arith.constant 11 : index
    %c0_43 = arith.constant 0 : index
    %49 = vector.load %arg1[%c0_42, %c11, %c0_43] : memref<1x400x4xbf16, #tpu.memory_space<vmem>>, vector<1x80x4xbf16>
    %50 = vector.shape_cast %49 : vector<1x80x4xbf16> to vector<80x4xbf16>
    %c8 = arith.constant 8 : index
    %c0_44 = arith.constant 0 : index
    %c0_45 = arith.constant 0 : index
    %51 = vector.load %arg2[%c8, %c0_44, %c0_45] : memref<9x4x8xbf16, #tpu.memory_space<vmem>>, vector<1x4x8xbf16>
    %52 = vector.shape_cast %51 : vector<1x4x8xbf16> to vector<4x8xbf16>
    %cst_46 = arith.constant dense<0.000000e+00> : vector<80x8xf32>
    %53 = tpu.matmul %50, %52, %cst_46 {dimension_numbers = #tpu.dot_dimension_numbers<[1], [0], [0], [1], [0, 0, 1, 1], [], []>} : vector<80x4xbf16>, vector<4x8xbf16>, vector<80x8xf32> -> vector<80x8xf32>
    %54 = arith.addf %48, %53 : vector<80x8xf32>
    %55 = tpu.iota {dimensions = array<i32: 0>} : vector<80x1xi32>
    %c10_i32 = arith.constant 10 : i32
    %c0_i32 = arith.constant 0 : i32
    %56 = arith.cmpi eq, %c10_i32, %c0_i32 : i32
    %c1_i32 = arith.constant 1 : i32
    %57 = arith.select %56, %c1_i32, %c10_i32 : i32
    %58 = vector.broadcast %57 : i32 to vector<80x1xi32>
    %59 = arith.remsi %55, %58 : vector<80x1xi32>
    %c0_i32_47 = arith.constant 0 : i32
    %60 = vector.broadcast %c0_i32_47 : i32 to vector<80x1xi32>
    %61 = arith.cmpi ne, %59, %60 : vector<80x1xi32>
    %c0_i32_48 = arith.constant 0 : i32
    %62 = vector.broadcast %c0_i32_48 : i32 to vector<80x1xi32>
    %63 = arith.cmpi slt, %59, %62 : vector<80x1xi32>
    %c0_i32_49 = arith.constant 0 : i32
    %64 = arith.cmpi slt, %57, %c0_i32_49 : i32
    %65 = vector.broadcast %64 : i1 to vector<80x1xi1>
    %66 = vector.broadcast %65 : vector<80x1xi1> to vector<80x1xi1>
    %67 = arith.xori %63, %66 : vector<80x1xi1>
    %68 = arith.andi %67, %61 : vector<80x1xi1>
    %69 = vector.broadcast %57 : i32 to vector<80x1xi32>
    %70 = arith.addi %59, %69 : vector<80x1xi32>
    %71 = arith.select %68, %70, %59 : vector<80x1xi1>, vector<80x1xi32>
    %c8_i32 = arith.constant 8 : i32
    %72 = vector.broadcast %c8_i32 : i32 to vector<80x1xi32>
    %73 = arith.cmpi slt, %71, %72 : vector<80x1xi32>
    %c0_50 = arith.constant 0 : index
    %c0_51 = arith.constant 0 : index
    %74 = vector.load %arg3[%c0_50, %c0_51] : memref<1x8xf32, #tpu.memory_space<vmem>>, vector<1x8xf32>
    %75 = vector.broadcast %74 : vector<1x8xf32> to vector<80x8xf32>
    %76 = arith.addf %54, %75 : vector<80x8xf32>
    %cst_52 = arith.constant 0.000000e+00 : f32
    %77 = vector.broadcast %cst_52 : f32 to vector<80x8xf32>
    %78 = arith.maximumf %76, %77 : vector<80x8xf32>
    %cst_53 = arith.constant 0.000000e+00 : f32
    %79 = vector.shape_cast %73 : vector<80x1xi1> to vector<80x1xi1>
    %80 = vector.broadcast %79 : vector<80x1xi1> to vector<80x8xi1>
    %81 = vector.broadcast %cst_53 : f32 to vector<80x8xf32>
    %82 = arith.select %80, %78, %81 : vector<80x8xi1>, vector<80x8xf32>
    %cst_54 = arith.constant 0.000000e+00 : bf16
    %83 = vector.broadcast %cst_54 : bf16 to vector<11x8xbf16>
    %c0_55 = arith.constant 0 : index
    %c0_56 = arith.constant 0 : index
    %84 = vector.load %arg8[%c0_55, %c0_56] : memref<110x8xbf16, #tpu.memory_space<vmem>>, vector<11x8xbf16>
    tpu.vector_store %arg8[%c0_55, %c0_56], %83 {strides = array<i32>} : memref<110x8xbf16, #tpu.memory_space<vmem>>, vector<11x8xbf16>,
    %cst_57 = arith.constant 0.000000e+00 : bf16
    %85 = vector.broadcast %cst_57 : bf16 to vector<12x8xbf16>
    %c91 = arith.constant 91 : index
    %c0_58 = arith.constant 0 : index
    %86 = vector.load %arg8[%c91, %c0_58] : memref<110x8xbf16, #tpu.memory_space<vmem>>, vector<12x8xbf16>
    tpu.vector_store %arg8[%c91, %c0_58], %85 {strides = array<i32>} : memref<110x8xbf16, #tpu.memory_space<vmem>>, vector<12x8xbf16>,
    %87 = arith.truncf %82 : vector<80x8xf32> to vector<80x8xbf16>
    %c11_59 = arith.constant 11 : index
    %c0_60 = arith.constant 0 : index
    %88 = vector.load %arg8[%c11_59, %c0_60] : memref<110x8xbf16, #tpu.memory_space<vmem>>, vector<80x8xbf16>
    tpu.vector_store %arg8[%c11_59, %c0_60], %87 {strides = array<i32>} : memref<110x8xbf16, #tpu.memory_space<vmem>>, vector<80x8xbf16>,
    %cst_61 = arith.constant 0.000000e+00 : f32
    %89 = vector.broadcast %cst_61 : f32 to vector<80x8xf32>
    %c0_62 = arith.constant 0 : index
    %c0_63 = arith.constant 0 : index
    %90 = vector.load %arg8[%c0_62, %c0_63] : memref<110x8xbf16, #tpu.memory_space<vmem>>, vector<80x8xbf16>
    %c0_64 = arith.constant 0 : index
    %c0_65 = arith.constant 0 : index
    %c0_66 = arith.constant 0 : index
    %91 = vector.load %arg4[%c0_64, %c0_65, %c0_66] : memref<9x8x8xbf16, #tpu.memory_space<vmem>>, vector<1x8x8xbf16>
    %92 = vector.shape_cast %91 : vector<1x8x8xbf16> to vector<8x8xbf16>
    %cst_67 = arith.constant dense<0.000000e+00> : vector<80x8xf32>
    %93 = tpu.matmul %90, %92, %cst_67 {dimension_numbers = #tpu.dot_dimension_numbers<[1], [0], [0], [1], [0, 0, 1, 1], [], []>} : vector<80x8xbf16>, vector<8x8xbf16>, vector<80x8xf32> -> vector<80x8xf32>
    %94 = arith.addf %89, %93 : vector<80x8xf32>
    %c1_68 = arith.constant 1 : index
    %c0_69 = arith.constant 0 : index
    %95 = vector.load %arg8[%c1_68, %c0_69] : memref<110x8xbf16, #tpu.memory_space<vmem>>, vector<80x8xbf16>
    %c1_70 = arith.constant 1 : index
    %c0_71 = arith.constant 0 : index
    %c0_72 = arith.constant 0 : index
    %96 = vector.load %arg4[%c1_70, %c0_71, %c0_72] : memref<9x8x8xbf16, #tpu.memory_space<vmem>>, vector<1x8x8xbf16>
    %97 = vector.shape_cast %96 : vector<1x8x8xbf16> to vector<8x8xbf16>
    %cst_73 = arith.constant dense<0.000000e+00> : vector<80x8xf32>
    %98 = tpu.matmul %95, %97, %cst_73 {dimension_numbers = #tpu.dot_dimension_numbers<[1], [0], [0], [1], [0, 0, 1, 1], [], []>} : vector<80x8xbf16>, vector<8x8xbf16>, vector<80x8xf32> -> vector<80x8xf32>
    %99 = arith.addf %94, %98 : vector<80x8xf32>
    %c2_74 = arith.constant 2 : index
    %c0_75 = arith.constant 0 : index
    %100 = vector.load %arg8[%c2_74, %c0_75] : memref<110x8xbf16, #tpu.memory_space<vmem>>, vector<80x8xbf16>
    %c2_76 = arith.constant 2 : index
    %c0_77 = arith.constant 0 : index
    %c0_78 = arith.constant 0 : index
    %101 = vector.load %arg4[%c2_76, %c0_77, %c0_78] : memref<9x8x8xbf16, #tpu.memory_space<vmem>>, vector<1x8x8xbf16>
    %102 = vector.shape_cast %101 : vector<1x8x8xbf16> to vector<8x8xbf16>
    %cst_79 = arith.constant dense<0.000000e+00> : vector<80x8xf32>
    %103 = tpu.matmul %100, %102, %cst_79 {dimension_numbers = #tpu.dot_dimension_numbers<[1], [0], [0], [1], [0, 0, 1, 1], [], []>} : vector<80x8xbf16>, vector<8x8xbf16>, vector<80x8xf32> -> vector<80x8xf32>
    %104 = arith.addf %99, %103 : vector<80x8xf32>
    %c10_80 = arith.constant 10 : index
    %c0_81 = arith.constant 0 : index
    %105 = vector.load %arg8[%c10_80, %c0_81] : memref<110x8xbf16, #tpu.memory_space<vmem>>, vector<80x8xbf16>
    %c3_82 = arith.constant 3 : index
    %c0_83 = arith.constant 0 : index
    %c0_84 = arith.constant 0 : index
    %106 = vector.load %arg4[%c3_82, %c0_83, %c0_84] : memref<9x8x8xbf16, #tpu.memory_space<vmem>>, vector<1x8x8xbf16>
    %107 = vector.shape_cast %106 : vector<1x8x8xbf16> to vector<8x8xbf16>
    %cst_85 = arith.constant dense<0.000000e+00> : vector<80x8xf32>
    %108 = tpu.matmul %105, %107, %cst_85 {dimension_numbers = #tpu.dot_dimension_numbers<[1], [0], [0], [1], [0, 0, 1, 1], [], []>} : vector<80x8xbf16>, vector<8x8xbf16>, vector<80x8xf32> -> vector<80x8xf32>
    %109 = arith.addf %104, %108 : vector<80x8xf32>
    %c11_86 = arith.constant 11 : index
    %c0_87 = arith.constant 0 : index
    %110 = vector.load %arg8[%c11_86, %c0_87] : memref<110x8xbf16, #tpu.memory_space<vmem>>, vector<80x8xbf16>
    %c4_88 = arith.constant 4 : index
    %c0_89 = arith.constant 0 : index
    %c0_90 = arith.constant 0 : index
    %111 = vector.load %arg4[%c4_88, %c0_89, %c0_90] : memref<9x8x8xbf16, #tpu.memory_space<vmem>>, vector<1x8x8xbf16>
    %112 = vector.shape_cast %111 : vector<1x8x8xbf16> to vector<8x8xbf16>
    %cst_91 = arith.constant dense<0.000000e+00> : vector<80x8xf32>
    %113 = tpu.matmul %110, %112, %cst_91 {dimension_numbers = #tpu.dot_dimension_numbers<[1], [0], [0], [1], [0, 0, 1, 1], [], []>} : vector<80x8xbf16>, vector<8x8xbf16>, vector<80x8xf32> -> vector<80x8xf32>
    %114 = arith.addf %109, %113 : vector<80x8xf32>
    %c12 = arith.constant 12 : index
    %c0_92 = arith.constant 0 : index
    %115 = vector.load %arg8[%c12, %c0_92] : memref<110x8xbf16, #tpu.memory_space<vmem>>, vector<80x8xbf16>
    %c5_93 = arith.constant 5 : index
    %c0_94 = arith.constant 0 : index
    %c0_95 = arith.constant 0 : index
    %116 = vector.load %arg4[%c5_93, %c0_94, %c0_95] : memref<9x8x8xbf16, #tpu.memory_space<vmem>>, vector<1x8x8xbf16>
    %117 = vector.shape_cast %116 : vector<1x8x8xbf16> to vector<8x8xbf16>
    %cst_96 = arith.constant dense<0.000000e+00> : vector<80x8xf32>
    %118 = tpu.matmul %115, %117, %cst_96 {dimension_numbers = #tpu.dot_dimension_numbers<[1], [0], [0], [1], [0, 0, 1, 1], [], []>} : vector<80x8xbf16>, vector<8x8xbf16>, vector<80x8xf32> -> vector<80x8xf32>
    %119 = arith.addf %114, %118 : vector<80x8xf32>
    %c20 = arith.constant 20 : index
    %c0_97 = arith.constant 0 : index
    %120 = vector.load %arg8[%c20, %c0_97] : memref<110x8xbf16, #tpu.memory_space<vmem>>, vector<80x8xbf16>
    %c6_98 = arith.constant 6 : index
    %c0_99 = arith.constant 0 : index
    %c0_100 = arith.constant 0 : index
    %121 = vector.load %arg4[%c6_98, %c0_99, %c0_100] : memref<9x8x8xbf16, #tpu.memory_space<vmem>>, vector<1x8x8xbf16>
    %122 = vector.shape_cast %121 : vector<1x8x8xbf16> to vector<8x8xbf16>
    %cst_101 = arith.constant dense<0.000000e+00> : vector<80x8xf32>
    %123 = tpu.matmul %120, %122, %cst_101 {dimension_numbers = #tpu.dot_dimension_numbers<[1], [0], [0], [1], [0, 0, 1, 1], [], []>} : vector<80x8xbf16>, vector<8x8xbf16>, vector<80x8xf32> -> vector<80x8xf32>
    %124 = arith.addf %119, %123 : vector<80x8xf32>
    %c21 = arith.constant 21 : index
    %c0_102 = arith.constant 0 : index
    %125 = vector.load %arg8[%c21, %c0_102] : memref<110x8xbf16, #tpu.memory_space<vmem>>, vector<80x8xbf16>
    %c7_103 = arith.constant 7 : index
    %c0_104 = arith.constant 0 : index
    %c0_105 = arith.constant 0 : index
    %126 = vector.load %arg4[%c7_103, %c0_104, %c0_105] : memref<9x8x8xbf16, #tpu.memory_space<vmem>>, vector<1x8x8xbf16>
    %127 = vector.shape_cast %126 : vector<1x8x8xbf16> to vector<8x8xbf16>
    %cst_106 = arith.constant dense<0.000000e+00> : vector<80x8xf32>
    %128 = tpu.matmul %125, %127, %cst_106 {dimension_numbers = #tpu.dot_dimension_numbers<[1], [0], [0], [1], [0, 0, 1, 1], [], []>} : vector<80x8xbf16>, vector<8x8xbf16>, vector<80x8xf32> -> vector<80x8xf32>
    %129 = arith.addf %124, %128 : vector<80x8xf32>
    %c22 = arith.constant 22 : index
    %c0_107 = arith.constant 0 : index
    %130 = vector.load %arg8[%c22, %c0_107] : memref<110x8xbf16, #tpu.memory_space<vmem>>, vector<80x8xbf16>
    %c8_108 = arith.constant 8 : index
    %c0_109 = arith.constant 0 : index
    %c0_110 = arith.constant 0 : index
    %131 = vector.load %arg4[%c8_108, %c0_109, %c0_110] : memref<9x8x8xbf16, #tpu.memory_space<vmem>>, vector<1x8x8xbf16>
    %132 = vector.shape_cast %131 : vector<1x8x8xbf16> to vector<8x8xbf16>
    %cst_111 = arith.constant dense<0.000000e+00> : vector<80x8xf32>
    %133 = tpu.matmul %130, %132, %cst_111 {dimension_numbers = #tpu.dot_dimension_numbers<[1], [0], [0], [1], [0, 0, 1, 1], [], []>} : vector<80x8xbf16>, vector<8x8xbf16>, vector<80x8xf32> -> vector<80x8xf32>
    %134 = arith.addf %129, %133 : vector<80x8xf32>
    %c0_112 = arith.constant 0 : index
    %c300_113 = arith.constant 300 : index
    %c0_114 = arith.constant 0 : index
    %135 = vector.load %arg1[%c0_112, %c300_113, %c0_114] : memref<1x400x4xbf16, #tpu.memory_space<vmem>>, vector<1x80x4xbf16>
    %136 = vector.shape_cast %135 : vector<1x80x4xbf16> to vector<80x4xbf16>
    %c0_115 = arith.constant 0 : index
    %c0_116 = arith.constant 0 : index
    %137 = vector.load %arg6[%c0_115, %c0_116] : memref<4x8xbf16, #tpu.memory_space<vmem>>, vector<4x8xbf16>
    %cst_117 = arith.constant dense<0.000000e+00> : vector<80x8xf32>
    %138 = tpu.matmul %136, %137, %cst_117 {dimension_numbers = #tpu.dot_dimension_numbers<[1], [0], [0], [1], [0, 0, 1, 1], [], []>} : vector<80x4xbf16>, vector<4x8xbf16>, vector<80x8xf32> -> vector<80x8xf32>
    %139 = arith.addf %134, %138 : vector<80x8xf32>
    %c0_118 = arith.constant 0 : index
    %c0_119 = arith.constant 0 : index
    %140 = vector.load %arg5[%c0_118, %c0_119] : memref<1x8xf32, #tpu.memory_space<vmem>>, vector<1x8xf32>
    %141 = vector.broadcast %140 : vector<1x8xf32> to vector<80x8xf32>
    %142 = arith.addf %139, %141 : vector<80x8xf32>
    %143 = arith.truncf %142 : vector<80x8xf32> to vector<80x8xbf16>
    %c0_120 = arith.constant 0 : index
    %c0_121 = arith.constant 0 : index
    %c0_122 = arith.constant 0 : index
    %144 = vector.load %arg7[%c0_120, %c0_121, %c0_122] : memref<1x80x8xbf16, #tpu.memory_space<vmem>>, vector<1x80x8xbf16>
    %145 = vector.shape_cast %144 : vector<1x80x8xbf16> to vector<80x8xbf16>
    %146 = vector.shape_cast %143 : vector<80x8xbf16> to vector<1x80x8xbf16>
    tpu.vector_store %arg7[%c0_120, %c0_121, %c0_122], %146 {strides = array<i32>} : memref<1x80x8xbf16, #tpu.memory_space<vmem>>, vector<1x80x8xbf16>,
    return
  }
  func.func @transform_0(%arg0: i32) -> (i32, i32, i32) {
    %c0_i32 = arith.constant 0 : i32
    %c0_i32_0 = arith.constant 0 : i32
    %c0_i32_1 = arith.constant 0 : i32
    return %arg0, %c0_i32, %c0_i32_0 : i32, i32, i32
  }
  func.func @transform_1(%arg0: i32) -> (i32, i32, i32) {
    %c0_i32 = arith.constant 0 : i32
    %c0_i32_0 = arith.constant 0 : i32
    %c0_i32_1 = arith.constant 0 : i32
    %c0_i32_2 = arith.constant 0 : i32
    return %c0_i32, %c0_i32_0, %c0_i32_1 : i32, i32, i32
  }
  func.func @transform_2(%arg0: i32) -> (i32, i32) {
    %c0_i32 = arith.constant 0 : i32
    %c0_i32_0 = arith.constant 0 : i32
    %c0_i32_1 = arith.constant 0 : i32
    return %c0_i32, %c0_i32_0 : i32, i32
  }
  func.func @transform_3(%arg0: i32) -> (i32, i32, i32) {
    %c0_i32 = arith.constant 0 : i32
    %c0_i32_0 = arith.constant 0 : i32
    %c0_i32_1 = arith.constant 0 : i32
    %c0_i32_2 = arith.constant 0 : i32
    return %c0_i32, %c0_i32_0, %c0_i32_1 : i32, i32, i32
  }
  func.func @transform_4(%arg0: i32) -> (i32, i32) {
    %c0_i32 = arith.constant 0 : i32
    %c0_i32_0 = arith.constant 0 : i32
    %c0_i32_1 = arith.constant 0 : i32
    return %c0_i32, %c0_i32_0 : i32, i32
  }
  func.func @transform_5(%arg0: i32) -> (i32, i32) {
    %c0_i32 = arith.constant 0 : i32
    %c0_i32_0 = arith.constant 0 : i32
    %c0_i32_1 = arith.constant 0 : i32
    return %c0_i32, %c0_i32_0 : i32, i32
  }
  func.func @transform_6(%arg0: i32) -> (i32, i32, i32) {
    %c0_i32 = arith.constant 0 : i32
    %c0_i32_0 = arith.constant 0 : i32
    %c0_i32_1 = arith.constant 0 : i32
    return %arg0, %c0_i32, %c0_i32_0 : i32, i32, i32
  }
}

</mosaic_0001>

<bundles_post_ra>
// kernel: tpu_custom_call.1
= control target key start
LH: loop header
LB: loop body
LE: loop exit
PB: predicated region body
PF: predicated region fallthrough
CT: control target
= control target key end

     0   :  { %s3449_s21 = smov 0   ;;  %s4604_s0 = inlined_call_operand.vmem [shape: bf16[2,400,4], index: 0, kind: input, shape index: {}]   ;;  %s4605_s1 = inlined_call_operand.vmem [shape: bf16[9,4,8], index: 1, kind: input, shape index: {}]   ;;  %s4606_s2 = inlined_call_operand.vmem [shape: f32[1,8], index: 2, kind: input, shape index: {}]   ;;  %s4607_s3 = inlined_call_operand.vmem [shape: bf16[9,8,8], index: 3, kind: input, shape index: {}]   ;;  %s4608_s4 = inlined_call_operand.vmem [shape: f32[1,8], index: 4, kind: input, shape index: {}]   ;;  %s4609_s5 = inlined_call_operand.vmem [shape: bf16[4,8], index: 5, kind: input, shape index: {}]   ;;  %s4610_s6 = inlined_call_operand.vmem [shape: bf16[2,80,8], index: 6, kind: output, shape index: {}]  }
   0x1 LB: > { %s2977_s22 = sadd.s32 4294967295, %s3411_s21   ;;  %p2981_p0 = scmp.ge.s32.totalorder %s3411_s21, 1  ;;  %s3411_s21 = sphi %s3449_s21, %s16_s21  }
   0x2   : > { %p212_p1 = scmp.lt.s32.totalorder %s3411_s21, 3 }
   0x4   : > { %p213_p2 = pnand %p2981_p0, %p212_p1 }
   0x5   : > { %p242_p3 = scmp.lt.s32.totalorder (!%p213_p2), %s2977_s22, 1 }
   0x6   : > { %216 = sbr.rel (%p213_p2) target bundleno = 711 (0x2c7), region = 44 }
   0xb   : > { %v2984_v0 = vld [vmem:[%s4605_s1 + $0x2] sm:$0x3]  ;;  %vm4614_vm0 = vcmask 1041408   ;;  %v3061_v2 = vld [vmem:[%s4605_s1 + $0x6] sm:$0x3]  ;;  %s4690_s22 = smov (!%p242_p3, %s2977_s22), 1 }
   0xc   : > { %v335_v1 = vsel %vm4614_vm0, %v2984_v0, 0  ;;  %v3035_v3 = vld [vmem:[%s4605_s1 + $0x4] sm:$0x3]  ;;  %v649_v4 = vsel %vm4614_vm0, %v3061_v2, 0  ;;  %v263_v6 = vld [vmem:[%s4605_s1] sm:$0x3] }
   0xd   : > { %344 = vmatpush.bf16.msra.mxu0 %v335_v1  ;;  %3389 = vmatpush.bf16.msra.mxu3 %v335_v1  ;;  %v550_v5 = vsel %vm4614_vm0, %v3035_v3, 0  ;;  %v412_v7 = vsel %vm4614_vm0, %v263_v6, 0  ;;  %s3392_s7 = smul.u32 200, %s4690_s22  ;;  %vm4612_vm1 = vcmask 1045504   ;;  %vm4611_vm2 = vcmask 31744  }
   0xe   : > { %3391 = vmatpush.bf16.msra.mxu2 %v550_v5  ;;  %3390 = vmatpush.bf16.msra.mxu1 %v412_v7  ;;  %vm489_vm3 = vsmask.f32 7424  ;;  %v3087_v41 = vld [vmem:[%s4605_s1 + $0x8] sm:$0x3]  ;;  %v3165_v59 = vld [vmem:[%s4605_s1 + $0xe] sm:$0x3] }
   0xf   : > { %s3479_s10 = scalar_lea.vmem %s4604_s0, %s3392_s7  ;;  %v763_v46 = vsel %vm4614_vm0, %v3087_v41, 0  ;;  %v3139_v60 = vld [vmem:[%s4605_s1 + $0xc] sm:$0x3]  ;;  %v1140_v63 = vsel %vm4614_vm0, %v3165_v59, 0  ;;  %vm997_vm4 = vcmask 1046528   ;;  %vm4613_vm6 = vcmask 1044480  }
  0x10   : > { %v2987_v8 = vld [vmem:[%s3479_s10 + $0x30] sm:$0xc]  ;;  %v3330_v9 = vld [vmem:[%s3479_s10 + $0x30] sm:$0xf0]  ;;  %v3331_v10 = vld [vmem:[%s3479_s10 + $0x38] sm:$0xff]  ;;  %v1025_v0 = vsel %vm4614_vm0, %v3139_v60, 0 }
  0x11   : > { %658 = vmatpush.bf16.msrb.mxu3 %v649_v4  ;;  %421 = vmatpush.bf16.msrb.mxu0 %v412_v7  ;;  %v2988_v11 = vor.u32 %v3330_v9, %v2987_v8  ;;  %v3332_v12 = vld [vmem:[%s3479_s10 + $0x40] sm:$0xff]  ;;  %v3336_v13 = vld [vmem:[%s3479_s10 + $0x8] sm:$0xff]  ;;  %v3337_v14 = vld [vmem:[%s3479_s10 + $0x10] sm:$0xff]  ;;  %v307_v15 = vrot.slane %v3331_v10, 2  ;;  %vm4615_vm5 = vsmask.f32 6400 }
  0x12   : > { %v3326_v16 = vld [vmem:[%s3479_s10 + $0x8] sm:$0xff]  ;;  %v309_v18 = vrot.slane %v3332_v12, 2  ;;  %v498_v19 = vshll.u32 %v3336_v13, 16  ;;  %v502_v20 = vshrl.u32 %v3336_v13, 16  ;;  %v506_v21 = vshll.u32 %v3337_v14, 16  ;;  %v3338_v29 = vld [vmem:[%s3479_s10 + $0x18] sm:$0xff]  ;;  %1034 = vmatpush.bf16.msrb.mxu2 %v1025_v0 }
  0x13   : > { %v306_v17 = vrot.slane %v2988_v11, 2  ;;  %3031 = vmatmul.msk.bf16.vlgmr.msra.gmra.mxu1 %vm4611_vm2, %v3326_v16  ;;  %v3333_v28 = vld [vmem:[%s3479_s10 + $0x48] sm:$0xff]  ;;  %v510_v31 = vshrl.u32 %v3337_v14, 16  ;;  %v514_v32 = vshll.u32 %v3338_v29, 16  ;;  %v3327_v33 = vld [vmem:[%s3479_s10 + $0x10] sm:$0xff]  ;;  %v3325_v34 = vld [vmem:[%s3479_s10] sm:$0xff] }
  0x14   : > { %v310_v23 = vsel %vm4612_vm1, %v307_v15, %v309_v18  ;;  %v500_v24 = vrot.slane %v498_v19, 1  ;;  %v508_v25 = vrot.slane %v506_v21, 1  ;;  %v311_v30 = vrot.slane %v3333_v28, 2  ;;  %v3335_v38 = vld [vmem:[%s3479_s10] sm:$0xff]  ;;  %v3334_v42 = vld [vmem:[%s3479_s10 + $0x50] sm:$0xff]  ;;  %v3328_v51 = vld [vmem:[%s3479_s10 + $0x18] sm:$0xff] }
  0x15   : > { %v308_v22 = vsel %vm4612_vm1, %v306_v17, %v307_v15  ;;  %3006 = vmatmul.msk.bf16.vlgmr.msra.gmra.mxu3 %vm4611_vm2, %v310_v23  ;;  %v516_v37 = vrot.slane %v514_v32, 1  ;;  %v493_v40 = vshll.u32 %v3335_v38, 16  ;;  %v491_v43 = vshrl.u32 %v3335_v38, 16  ;;  %v3339_v45 = vld [vmem:[%s3479_s10 + $0x20] sm:$0xff]  ;;  %v274_v56 = vld [vmem:[%s3479_s10 + $0x58] sm:$0x3] }
  0x16   : > { %3005 = vmatmul.msk.bf16.vlgmr.msra.gmra.mxu0 %vm4611_vm2, %v308_v22  ;;  %v504_v26 = vor.u32 %v502_v20, %v500_v24  ;;  %v312_v35 = vsel %vm4612_vm1, %v309_v18, %v311_v30  ;;  %v512_v36 = vor.u32 %v510_v31, %v508_v25  ;;  %v313_v47 = vrot.slane %v3334_v42, 2  ;;  %v458_v57 = vld [vmem:[%s3479_s10 + $0x28] sm:$0x1]  ;;  %v3090_v1 = vld [vmem:[%s3479_s10 + $0x94] sm:$0xc]  ;;  %1149 = vmatpush.bf16.msra.mxu3 %v1140_v63  ;;  %v3346_v7 = vld [vmem:[%s3479_s10 + $0x9c] sm:$0xff] }
  0x17   : > { %559 = vmatpush.bf16.msra.mxu0 %v550_v5  ;;  %v495_v44 = vrot.slane %v493_v40, 1  ;;  %v518_v49 = vshrl.u32 %v3338_v29, 16  ;;  %v522_v50 = vshll.u32 %v3339_v45, 16  ;;  %v298_v58 = vunpack.c.l.b16 %v274_v56  ;;  %v3345_v2 = vld [vmem:[%s3479_s10 + $0x94] sm:$0xf0]  ;;  %v3329_v16 = vld [vmem:[%s3479_s10 + $0x20] sm:$0xff] }
  0x18   : > { %v509_v27 = vsel %vm489_vm3, %v504_v26, %v508_v25  ;;  %v517_v39 = vsel %vm489_vm3, %v512_v36, %v516_v37  ;;  %v314_v52 = vsel %vm4612_vm1, %v311_v30, %v313_v47  ;;  %v482_v62 = vunpack.c.l.b16 %v458_v57  ;;  %v3113_v4 = vld [vmem:[%s4605_s1 + $0xa] sm:$0x3]  ;;  %v3191_v5 = vld [vmem:[%s4605_s1 + $0x10] sm:$0x3]  ;;  %v3142_v29 = vld [vmem:[%s3479_s10 + $0x4] sm:$0xe] }
  0x19   : > { %3057 = vmatmul.msk.bf16.vlgmr.msra.gmra.mxu2 %vm4611_vm2, %v509_v27  ;;  %v496_v48 = vor.u32 %v495_v44, %v491_v43  ;;  %v520_v54 = vor.u32 %v518_v49, %v516_v37  ;;  %v524_v55 = vrot.slane %v522_v50, 1  ;;  %v304_v3 = vpack.c.b16 %v298_v58, %v298_v58  ;;  %v3350_v17 = vld [vmem:[%s3479_s10 + $0x64] sm:$0xff]  ;;  %v3351_v22 = vld [vmem:[%s3479_s10 + $0x6c] sm:$0xff]  ;;  %v3352_v41 = vld [vmem:[%s3479_s10 + $0x74] sm:$0xff]  ;;  %s3393_s25 = smul.u32 40, %s4690_s22 }
  0x1a   : > { %v488_v6 = vpack.c.b16 %v482_v62, %v482_v62  ;;  %v3091_v8 = vor.u32 %v3345_v2, %v3090_v1  ;;  %v910_v9 = vsel %vm4614_vm0, %v3113_v4, 0  ;;  %v1262_v10 = vsel %vm4614_vm0, %v3191_v5, 0  ;;  %v3347_v28 = vld [vmem:[%s3479_s10 + $0xa4] sm:$0xff]  ;;  %v3349_v58 = vld [vmem:[%s3479_s10 + $0xb4] sm:$0xff] }
  0x1b   : > { %v501_v53 = vsel %vm489_vm3, %v496_v48, %v500_v24  ;;  %v525_v61 = vsel %vm489_vm3, %v520_v54, %v524_v55  ;;  %919 = vmatpush.bf16.msrb.mxu1 %v910_v9  ;;  %v315_v11 = vrot.slane %v304_v3, 2  ;;  %v526_v12 = vshrl.u32 %v3339_v45, 16  ;;  %v3355_v30 = vld [vmem:[%s3479_s10 + $0x4] sm:$0xf0]  ;;  %v3348_v45 = vld [vmem:[%s3479_s10 + $0xac] sm:$0xff]  ;;  %v3572_v48 = vld [vmem:[%s3479_s10 + $0x14] sm:$0xff]  ;;  %s4564_s28 = scalar_lea.vmem %s4610_s6, %s3393_s25 }
  0x1c   : > { %v530_v13 = vshll.u32 %v488_v6, 16  ;;  %v736_v14 = vrot.slane %v3091_v8, 2  ;;  %v737_v15 = vrot.slane %v3346_v7, 2  ;;  %v853_v23 = vshll.u32 %v3350_v17, 16  ;;  %v3340_v37 = vld [vmem:[%s3479_s10 + $0x64] sm:$0xff]  ;;  %v3353_v54 = vld [vmem:[%s3479_s10 + $0x7c] sm:$0xff] }
  0x1d   : > { %v316_v18 = vsel %vm4612_vm1, %v313_v47, %v315_v11  ;;  %v528_v19 = vor.u32 %v526_v12, %v524_v55  ;;  %v851_v25 = vshrl.u32 %v3350_v17, 16  ;;  %v858_v27 = vshll.u32 %v3351_v22, 16  ;;  %v3342_v0 = vld [vmem:[%s3479_s10 + $0x74] sm:$0xff]  ;;  %v705_v3 = vld [vmem:[%s3479_s10 + $0xbc] sm:$0x3]  ;;  %v3354_v4 = vld [vmem:[%s3479_s10 + $0x84] sm:$0xff] }
  0x1e   : > { %v532_v20 = vrot.slane %v530_v13, 1  ;;  %v738_v21 = vsel %vm4612_vm1, %v736_v14, %v737_v15  ;;  %v855_v26 = vrot.slane %v853_v23, 1  ;;  %v862_v43 = vshrl.u32 %v3351_v22, 16  ;;  %v3600_v12 = vld [vmem:[%s3479_s10 + $0x24] sm:$0xff]  ;;  %v819_v13 = vld [vmem:[%s3479_s10 + $0x8c] sm:$0x1] }
  0x1f   : > { %v860_v32 = vrot.slane %v858_v27, 1  ;;  %v866_v44 = vshll.u32 %v3352_v41, 16  ;;  %v741_v49 = vrot.slane %v3348_v45, 2  ;;  %v870_v56 = vshrl.u32 %v3352_v41, 16  ;;  %v3343_v17 = vld [vmem:[%s3479_s10 + $0x7c] sm:$0xff]  ;;  %v3344_v41 = vld [vmem:[%s3479_s10 + $0x84] sm:$0xff] }
  0x20   : > { %v533_v24 = vsel %vm489_vm3, %v528_v19, %v532_v20  ;;  %v856_v31 = vor.u32 %v855_v26, %v851_v25  ;;  %v874_v57 = vshll.u32 %v3353_v54, 16  ;;  %v743_v62 = vrot.slane %v3349_v58, 2  ;;  %v966_v22 = vld [vmem:[%s3479_s10 + $0x2c] sm:$0x1] }
  0x21   : > { %v868_v47 = vrot.slane %v866_v44, 1  ;;  %v729_v6 = vunpack.c.l.b16 %v705_v3  ;;  %v878_v7 = vshrl.u32 %v3353_v54, 16  ;;  %v882_v8 = vshll.u32 %v3354_v4, 16 }
  0x22   : > { %v861_v36 = vsel %vm489_vm3, %v856_v31, %v860_v32  ;;  %v876_v60 = vrot.slane %v874_v57, 1  ;;  %v744_v2 = vsel %vm4612_vm1, %v741_v49, %v743_v62  ;;  %v886_v27 = vshrl.u32 %v3354_v4, 16 }
  0x23   : > { %3032 = vmatmul.msk.bf16.gmra.mxu1 %vm4611_vm2, %v3327_v33  ;;  %v3555_v33 = vld [vmem:[%s3479_s10 + $0xc] sm:$0xff]  ;;  %v872_v59 = vor.u32 %v870_v56, %v868_v47  ;;  %v735_v9 = vpack.c.b16 %v729_v6, %v729_v6  ;;  %v884_v11 = vrot.slane %v882_v8, 1  ;;  %vm1982_vm7 = vcmask 1043456  }
  0x24   : > { %v1202_v25 = vshrl.u32 %v3555_v33, 16  ;;  %v1205_v26 = vshll.u32 %v3555_v33, 16  ;;  %vm1725_vm12 = vcmask 58368   ;;  %vm1726_vm13 = vsmask.f32 1280 }
  0x25   : > { %3007 = vmatmul.msk.bf16.gmra.mxu3 %vm4611_vm2, %v312_v35  ;;  %v739_v35 = vrot.slane %v3347_v28, 2  ;;  %v877_v63 = vsel %vm489_vm3, %v872_v59, %v876_v60  ;;  %v745_v14 = vrot.slane %v735_v9, 2  ;;  %vm3808_vm15 = vmand %vm1725_vm12, %vm1726_vm13 }
  0x26   : > { %3030 = vmatmul.msk.bf16.vlgmr.msrb.gmra.mxu0 %vm4611_vm2, %v3325_v34  ;;  %v3557_v34 = vor.u32 %v3355_v30, %v3142_v29  ;;  %v990_v29 = vunpack.c.l.b16 %v966_v22 }
  0x27   : > { %772 = vmatpush.bf16.msrb.mxu0 %v763_v46  ;;  %v740_v40 = vsel %vm4612_vm1, %v737_v15, %v739_v35  ;;  %v864_v46 = vor.u32 %v862_v43, %v860_v32  ;;  %v746_v19 = vsel %vm4612_vm1, %v743_v62, %v745_v14  ;;  %v1204_v32 = vrot.slane %v1202_v25, 1  ;;  %v3362_v14 = vld [vmem:[%s3479_s10 + $0x44] sm:$0xff] }
  0x28   : > { %v998_v38 = vrot.slane %v3557_v34, 1  ;;  %v1194_v23 = vshrl.u32 %v3557_v34, 16 }
  0x29   : > { %3058 = vmatmul.msk.bf16.gmra.mxu2 %vm4611_vm2, %v517_v39  ;;  %v999_v39 = vrot.slane %v3555_v33, 1  ;;  %v869_v50 = vsel %vm489_vm3, %v864_v46, %v868_v47  ;;  %v1211_v46 = vshrl.u32 %v3572_v48, 16  ;;  %v1214_v47 = vshll.u32 %v3572_v48, 16 }
  0x2a   : > { %v1196_v30 = vrot.slane %v1194_v23, 1 }
  0x2b   : > { %v1000_v42 = vsel %vm997_vm4, %v998_v38, %v999_v39  ;;  %v996_v38 = vpack.c.b16 %v990_v29, %v990_v29  ;;  %v1213_v57 = vrot.slane %v1211_v46, 1  ;;  %v1216_v58 = vrot.slane %v1214_v47, 2 }
  0x2d   : > { %v1007_v43 = vrot.slane %v996_v38, 1  ;;  %v1186_v38 = vld [vmem:[%s3479_s10 + $0x2c] sm:$0x3] }
  0x33   : > { %3033 = vmatmul.msk.bf16.gmra.mxu1 %vm4611_vm2, %v3328_v51  ;;  %v3341_v51 = vld [vmem:[%s3479_s10 + $0x6c] sm:$0xff] }
  0x35   : > { %3008 = vmatmul.msk.bf16.gmra.mxu3 %vm4611_vm2, %v314_v52  ;;  %v1001_v52 = vrot.slane %v3572_v48, 1  ;;  %v1217_v48 = vor.u32 %v1216_v58, %v1213_v57 }
  0x36   : > { %3056 = vmatmul.msk.bf16.vlgmr.msra.gmra.mxu0 %vm4611_vm2, %v501_v53  ;;  %v742_v53 = vsel %vm4612_vm1, %v739_v35, %v741_v49  ;;  %v1207_v35 = vrot.slane %v1205_v26, 2  ;;  %v3168_v49 = vld [vmem:[%s3479_s10 + $0x34] sm:$0x8] }
  0x37   : > { %1271 = vmatpush.bf16.msra.mxu0 %v1262_v10  ;;  %v1002_v55 = vsel %vm997_vm4, %v999_v39, %v1001_v52  ;;  %v880_v10 = vor.u32 %v878_v7, %v876_v60 }
  0x39   : > { %3059 = vmatmul.msk.bf16.gmra.mxu2 %vm4611_vm2, %v525_v61  ;;  %v3586_v61 = vld [vmem:[%s3479_s10 + $0x1c] sm:$0xff]  ;;  %v885_v15 = vsel %vm489_vm3, %v880_v10, %v884_v11 }
  0x3a   : > { %v1003_v1 = vrot.slane %v3586_v61, 1  ;;  %v1220_v7 = vshrl.u32 %v3586_v61, 16  ;;  %v1223_v8 = vshll.u32 %v3586_v61, 16 }
  0x3c   : > { %v1004_v5 = vsel %vm997_vm4, %v1001_v52, %v1003_v1 }
  0x43   : > { %3034 = vmatmul.msk.bf16.gmra.mxu1 %vm4611_vm2, %v3329_v16  ;;  %v843_v16 = vunpack.c.l.b16 %v819_v13 }
  0x45   : > { %3009 = vmatmul.msk.bf16.gmra.mxu3 %vm4611_vm2, %v316_v18  ;;  %v1005_v18 = vrot.slane %v3600_v12, 1  ;;  %v849_v20 = vpack.c.b16 %v843_v16, %v843_v16  ;;  %v1225_v16 = vrot.slane %v1223_v8, 2 }
  0x46   : > { %3108 = vmatmul.msk.bf16.vlgmr.msrb.gmra.mxu0 %vm4611_vm2, %v738_v21 }
  0x47   : > { %v1006_v21 = vsel %vm997_vm4, %v1003_v1, %v1005_v18  ;;  %v890_v28 = vshll.u32 %v849_v20, 16  ;;  %v1008_v45 = vsel %vm997_vm4, %v1005_v18, %v1007_v43 }
  0x49   : > { %3060 = vmatmul.msk.bf16.gmra.mxu2 %vm4611_vm2, %v533_v24  ;;  %v1197_v24 = vshll.u32 %v3557_v34, 16  ;;  %v1208_v34 = vor.u32 %v1207_v35, %v1204_v32  ;;  %v3363_v35 = vld [vmem:[%s3479_s10 + $0x4c] sm:$0xff] }
  0x4b   : > { %v1199_v31 = vrot.slane %v1197_v24, 2  ;;  %v1218_v4 = vsel %vm4615_vm5, %v1208_v34, %v1217_v48 }
  0x4d   : > { %v1200_v39 = vor.u32 %v1199_v31, %v1196_v30 }
  0x4f   : > { %v1209_v44 = vsel %vm4615_vm5, %v1200_v39, %v1208_v34 }
  0x53   : > { %3134 = vmatmul.msk.bf16.vlgmr.msrb.gmra.mxu1 %vm4611_vm2, %v861_v36  ;;  %v888_v36 = vor.u32 %v886_v27, %v884_v11  ;;  %v1229_v27 = vshrl.u32 %v3600_v12, 16 }
  0x55   : > { %3082 = vmatmul.msk.bf16.vlgmr.msrb.gmra.mxu3 %vm4611_vm2, %v3340_v37  ;;  %v892_v37 = vrot.slane %v890_v28, 1  ;;  %v1232_v28 = vshll.u32 %v3600_v12, 16 }
  0x56   : > { %3109 = vmatmul.msk.bf16.gmra.mxu0 %vm4611_vm2, %v740_v40 }
  0x57   : > { %v893_v33 = vsel %vm489_vm3, %v888_v36, %v892_v37  ;;  %v1231_v36 = vrot.slane %v1229_v27, 1  ;;  %v1234_v37 = vrot.slane %v1232_v28, 2 }
  0x59   : > { %3160 = vmatmul.msk.bf16.vlgmr.msrb.gmra.mxu2 %vm4611_vm2, %v1000_v42 }
  0x63   : > { %3135 = vmatmul.msk.bf16.gmra.mxu1 %vm4611_vm2, %v869_v50  ;;  %v3360_v50 = vld [vmem:[%s3479_s10 + $0x34] sm:$0xf0] }
  0x64   : > { %v3169_v56 = vor.u32 %v3360_v50, %v3168_v49 }
  0x65   : > { %3083 = vmatmul.msk.bf16.gmra.mxu3 %vm4611_vm2, %v3341_v51 }
  0x66   : > { %3110 = vmatmul.msk.bf16.gmra.mxu0 %vm4611_vm2, %v742_v53  ;;  %v1113_v62 = vrot.slane %v3169_v56, 3 }
  0x69   : > { %3161 = vmatmul.msk.bf16.gmra.mxu2 %vm4611_vm2, %v1002_v55  ;;  %v3361_v55 = vld [vmem:[%s3479_s10 + $0x3c] sm:$0xff] }
  0x73   : > { %3136 = vmatmul.msk.bf16.gmra.mxu1 %vm4611_vm2, %v877_v63  ;;  %v1114_v63 = vrot.slane %v3361_v55, 3  ;;  %v3364_v55 = vld [vmem:[%s3479_s10 + $0x54] sm:$0xff] }
  0x75   : > { %3084 = vmatmul.msk.bf16.gmra.mxu3 %vm4611_vm2, %v3342_v0  ;;  %v1115_v3 = vsel %vm4613_vm6, %v1113_v62, %v1114_v63 }
  0x76   : > { %3111 = vmatmul.msk.bf16.gmra.mxu0 %vm4611_vm2, %v744_v2 }
  0x79   : > { %3162 = vmatmul.msk.bf16.gmra.mxu2 %vm4611_vm2, %v1004_v5 }
  0x83   : > { %3137 = vmatmul.msk.bf16.gmra.mxu1 %vm4611_vm2, %v885_v15  ;;  %v1222_v15 = vrot.slane %v1220_v7, 1  ;;  %v1081_v7 = vld [vmem:[%s3479_s10 + $0x5c] sm:$0x7] }
  0x85   : > { %3085 = vmatmul.msk.bf16.gmra.mxu3 %vm4611_vm2, %v3343_v17  ;;  %v1226_v20 = vor.u32 %v1225_v16, %v1222_v15 }
  0x86   : > { %3112 = vmatmul.msk.bf16.gmra.mxu0 %vm4611_vm2, %v746_v19  ;;  %v1116_v19 = vrot.slane %v3362_v14, 3 }
  0x87   : > { %v1227_v24 = vsel %vm4615_vm5, %v1217_v48, %v1226_v20  ;;  %v1120_v48 = vrot.slane %v3364_v55, 3 }
  0x88   : > { %v1117_v61 = vsel %vm4613_vm6, %v1114_v63, %v1116_v19 }
  0x89   : > { %3163 = vmatmul.msk.bf16.gmra.mxu2 %vm4611_vm2, %v1006_v21 }
  0x90   : > { %v428_v40 = vpop.f32.mrf.mxu1 }
  0x93   : > { %v346_v42 = vpop.f32.mrf.mxu0  ;;  %3138 = vmatmul.msk.bf16.gmra.mxu1 %vm4611_vm2, %v893_v33  ;;  %v1235_v33 = vor.u32 %v1234_v37, %v1231_v36  ;;  %v3197_v37 = vld [vmem:[%s4607_s3 + $0x4] sm:$0xf] }
  0x95   : > { %3086 = vmatmul.msk.bf16.gmra.mxu3 %vm4611_vm2, %v3344_v41  ;;  %v1190_v41 = vunpack.c.l.b16 %v1186_v38 }
  0x96   : > { %3192 = vmatmul.msk.bf16.vlgmr.msra.gmra.mxu0 %vm4611_vm2, %v1209_v44 }
  0x97   : > { %v1191_v46 = vpack.c.b16 %v1190_v41, %v1190_v41 }
  0x98   : > { %v351_v51 = vpop.f32.mrf.mxu3  ;;  %v3628_v52 = vpop.f32.mrf.mxu1 }
  0x99   : > { %v429_v53 = vadd.f32 %v428_v40, %v351_v51  ;;  %3164 = vmatmul.msk.bf16.gmra.mxu2 %vm4611_vm2, %v1008_v45  ;;  %v1118_v40 = vrot.slane %v3363_v35, 3  ;;  %v1236_v45 = vsel %vm4615_vm5, %v1226_v20, %v1235_v33  ;;  %v1238_v49 = vshrl.u32 %v1191_v46, 16 }
  0x9a   : > { %v1241_v50 = vshll.u32 %v1191_v46, 16 }
  0x9b   : > { %v3631_v54 = vpop.f32.mrf.mxu0  ;;  %v1119_v12 = vsel %vm4613_vm6, %v1116_v19, %v1118_v40  ;;  %v1240_v57 = vrot.slane %v1238_v49, 1 }
  0x9c   : > { %v566_v59 = vpop.f32.mrf.mxu2  ;;  %v1243_v58 = vrot.slane %v1241_v50, 2 }
  0x9d   : > { %v3634_v60 = vadd.f32 %v566_v59, %v429_v53 }
  0xa0   : > { %v3636_v0 = vpop.f32.mrf.mxu3  ;;  %v433_v1 = vpop.f32.mrf.mxu1 }
  0xa3   : > { %v423_v2 = vpop.f32.mrf.mxu0 }
  0xa4   : > { %v424_v5 = vadd.f32 %v423_v2, %v346_v42  ;;  %v3640_v6 = vpop.f32.mrf.mxu2 }
  0xa5   : > { %3186 = vmatmul.msk.bf16.vlgmr.msra.gmra.mxu3 %vm4611_vm2, %v1115_v3  ;;  %v1121_v3 = vsel %vm4613_vm6, %v1118_v40, %v1120_v48 }
  0xa6   : > { %3193 = vmatmul.msk.bf16.gmra.mxu0 %vm4611_vm2, %v1218_v4 }
  0xa8   : > { %v356_v9 = vpop.f32.mrf.mxu3  ;;  %v3646_v10 = vpop.f32.mrf.mxu1 }
  0xa9   : > { %v434_v11 = vadd.f32 %v433_v1, %v356_v9  ;;  %v1244_v1 = vor.u32 %v1243_v58, %v1240_v57 }
  0xab   : > { %v3648_v13 = vpop.f32.mrf.mxu0 }
  0xac   : > { %v571_v17 = vpop.f32.mrf.mxu2 }
  0xad   : > { %v3651_v18 = vadd.f32 %v571_v17, %v434_v11  ;;  %v1105_v11 = vunpack.c.l.b16 %v1081_v7 }
  0xaf   : > { %v1111_v16 = vpack.c.b16 %v1105_v11, %v1105_v11 }
  0xb0   : > { %v3653_v21 = vpop.f32.mrf.mxu3  ;;  %v438_v22 = vpop.f32.mrf.mxu1 }
  0xb3   : > { %v561_v23 = vpop.f32.mrf.mxu0 }
  0xb4   : > { %v586_v25 = vadd.f32 %v561_v23, %v424_v5  ;;  %v3657_v26 = vpop.f32.mrf.mxu2  ;;  %v1245_v5 = vsel %vm4615_vm5, %v1235_v33, %v1244_v1  ;;  %v1122_v23 = vrot.slane %v1111_v16, 3 }
  0xb5   : > { %3187 = vmatmul.msk.bf16.gmra.mxu3 %vm4611_vm2, %v1117_v61 }
  0xb6   : > { %3194 = vmatmul.msk.bf16.gmra.mxu0 %vm4611_vm2, %v1227_v24  ;;  %v1123_v24 = vsel %vm4613_vm6, %v1120_v48, %v1122_v23 }
  0xb8   : > { %v361_v29 = vpop.f32.mrf.mxu3  ;;  %v3663_v30 = vpop.f32.mrf.mxu1 }
  0xb9   : > { %v439_v31 = vadd.f32 %v438_v22, %v361_v29 }
  0xbb   : > { %v3665_v32 = vpop.f32.mrf.mxu0 }
  0xbc   : > { %v576_v39 = vpop.f32.mrf.mxu2 }
  0xbd   : > { %v3669_v34 = vadd.f32 %v576_v39, %v439_v31  ;;  %v1984_v39 = vsel %vm1982_vm7, %v3197_v37, 0 }
  0xbe   : > { %1993 = vmatpush.bf16.msra.mxu1 %v1984_v39 }
  0xc0   : > { %v3671_v42 = vpop.f32.mrf.mxu3  ;;  %v443_v43 = vpop.f32.mrf.mxu1 }
  0xc3   : > { %v774_v44 = vpop.f32.mrf.mxu0 }
  0xc4   : > { %v3675_v47 = vpop.f32.mrf.mxu2 }
  0xc5   : > { %3188 = vmatmul.msk.bf16.gmra.mxu3 %vm4611_vm2, %v1119_v12 }
  0xc6   : > { %3195 = vmatmul.msk.bf16.gmra.mxu0 %vm4611_vm2, %v1236_v45 }
  0xc8   : > { %v366_v51 = vpop.f32.mrf.mxu3  ;;  %v3682_v62 = vpop.f32.mrf.mxu1 }
  0xc9   : > { %v444_v53 = vadd.f32 %v443_v43, %v366_v51 }
  0xcb   : > { %v3680_v56 = vpop.f32.mrf.mxu0 }
  0xcc   : > { %v581_v59 = vpop.f32.mrf.mxu2 }
  0xcd   : > { %v3684_v63 = vadd.f32 %v581_v59, %v444_v53 }
  0xd0   : > { %v3686_v2 = vpop.f32.mrf.mxu3  ;;  %v3693_v9 = vpop.f32.mrf.mxu1 }
  0xd3   : > { %v779_v4 = vpop.f32.mrf.mxu0 }
  0xd4   : > { %v3691_v8 = vpop.f32.mrf.mxu2 }
  0xd5   : > { %3189 = vmatmul.msk.bf16.gmra.mxu3 %vm4611_vm2, %v1121_v3 }
  0xd6   : > { %3196 = vmatmul.msk.bf16.gmra.mxu0 %vm4611_vm2, %v1245_v5 }
  0xd8   : > { %v660_v14 = vpop.f32.mrf.mxu3  ;;  %v3703_v22 = vpop.f32.mrf.mxu1 }
  0xd9   : > { %v685_v15 = vadd.f32 %v660_v14, %v586_v25  ;;  %v1890_v25 = vld [vmem:[%s4607_s3] sm:$0xf]  ;;  %v426_v14 = vadd.f32 %v3648_v13, %v3631_v54 }
  0xda   : > { %v2031_v35 = vsel %vm1982_vm7, %v1890_v25, 0 }
  0xdb   : > { %v3697_v17 = vpop.f32.mrf.mxu0  ;;  %v3699_v19 = vadd.f32 %v774_v44, %v685_v15  ;;  %2040 = vmatpush.bf16.msra.mxu2 %v2031_v35  ;;  %v587_v35 = vadd.f32 %v3665_v32, %v426_v14 }
  0xdc   : > { %v3701_v20 = vpop.f32.mrf.mxu2 }
  0xe0   : > { %v662_v61 = vpop.f32.mrf.mxu3  ;;  %v3712_v31 = vpop.f32.mrf.mxu1 }
  0xe3   : > { %v784_v27 = vpop.f32.mrf.mxu0 }
  0xe4   : > { %v3707_v28 = vpop.f32.mrf.mxu2 }
  0xe5   : > { %3190 = vmatmul.msk.bf16.gmra.mxu3 %vm4611_vm2, %v1123_v24 }
  0xe8   : > { %v665_v29 = vpop.f32.mrf.mxu3  ;;  %v3726_v12 = vpop.f32.mrf.mxu1 }
  0xe9   : > { %v687_v36 = vadd.f32 %v665_v29, %v3634_v60  ;;  %v1308_v60 = vlaneseq  ;;  %v431_v29 = vadd.f32 %v3628_v52, %v3636_v0  ;;  %v436_v52 = vadd.f32 %v3646_v10, %v3653_v21 }
  0xea   : > { %v441_v10 = vadd.f32 %v3663_v30, %v3671_v42 }
  0xeb   : > { %v3719_v38 = vpop.f32.mrf.mxu0  ;;  %v3722_v40 = vadd.f32 %v779_v4, %v687_v36  ;;  %v3730_v44 = vshrl.u32 %v1308_v60, 7 }
  0xec   : > { %v3724_v33 = vpop.f32.mrf.mxu2 }
  0xed   : > { %v1322_v45 = vand.u32 65535, %v3730_v44  ;;  %v1323_v51 = vshrl.u32 %v3730_v44, 16  ;;  %v3744_v7 = vadd.s32 8, %v3730_v44 }
  0xef   : > { %v1326_v53 = vmul.u32 52428, %v1322_v45  ;;  %v1325_v58 = vmul.u32 52429, %v1322_v45  ;;  %v1327_v59 = vmul.u32 52429, %v1323_v51  ;;  %v1328_v3 = vmul.u32 52428, %v1323_v51 }
  0xf0   : > { %v667_v41 = vpop.f32.mrf.mxu3  ;;  %v3741_v1 = vpop.f32.mrf.mxu1  ;;  %v1351_v23 = vand.u32 65535, %v3744_v7  ;;  %v1352_v25 = vshrl.u32 %v3744_v7, 16  ;;  %v589_v45 = vadd.f32 %v3640_v6, %v431_v29  ;;  %v591_v6 = vadd.f32 %v3657_v26, %v436_v52 }
  0xf1   : > { %v1329_v48 = vshll.u32 %v1326_v53, 16  ;;  %v1331_v4 = vshll.u32 %v1327_v59, 16  ;;  %v1330_v24 = vshrl.u32 %v1326_v53, 16  ;;  %v1332_v54 = vshrl.u32 %v1327_v59, 16 }
  0xf2   : > { %v1355_v37 = vmul.u32 52428, %v1351_v23  ;;  %v1354_v13 = vmul.u32 52429, %v1351_v23  ;;  %v3757_v60 = vmul.u32 52429, %v1352_v25  ;;  %v1357_v0 = vmul.u32 52428, %v1352_v25 }
  0xf3   : > { %v3728_v43 = vpop.f32.mrf.mxu0  ;;  %vm1333_vm8 = vc.u32 %v1325_v58, %v1329_v48  ;;  %v1335_v5 = vadd.s32 %v1329_v48, %v1325_v58  ;;  %v3766_v58 = vadd.s32 16, %v3730_v44  ;;  %v688_v59 = vadd.f32 %v667_v41, %v589_v45 }
  0xf4   : > { %v3733_v49 = vpop.f32.mrf.mxu2  ;;  %v1358_v53 = vshll.u32 %v1355_v37, 16  ;;  %v1360_v32 = vshll.u32 %v3757_v60, 16 }
  0xf5   : > { %vm1337_vm9 = vc.u32 %v1335_v5, %v1331_v4  ;;  %v1380_v5 = vand.u32 65535, %v3766_v58  ;;  %v1381_v26 = vshrl.u32 %v3766_v58, 16 }
  0xf6   : > { %vm1362_vm10 = vc.u32 %v1354_v13, %v1358_v53 }
  0xf7   : > { %v3782_v29 = vmul.u32 52428, %v1380_v5 }
  0xf8   : > { %v670_v46 = vpop.f32.mrf.mxu3  ;;  %v3768_v48 = vpop.f32.mrf.mxu1 }
  0xf9   : > { %v689_v50 = vadd.f32 %v670_v46, %v3651_v18  ;;  %v3413_v18 = vmov 0   ;;  %v686_v46 = vadd.f32 %v662_v61, %v587_v35  ;;  %v3785_v35 = vmul.u32 52429, %v1381_v26 }
  0xfa   : > { %v1334_v11 = vsel %vm1333_vm8, 1, %v3413_v18  ;;  %v1363_v4 = vsel %vm1362_vm10, 1, %v3413_v18  ;;  %vm1731_vm8 = vcmask 60417  }
  0xfb   : > { %v3737_v55 = vpop.f32.mrf.mxu0  ;;  %v3739_v57 = vadd.f32 %v784_v27, %v689_v50  ;;  %v1336_v16 = vadd.s32 %v1334_v11, %v1328_v3  ;;  %v1338_v27 = vsel %vm1337_vm9, 1, %v3413_v18  ;;  %v1364_v3 = vadd.s32 %v1358_v53, %v1354_v13 }
  0xfc   : > { %v3755_v39 = vpop.f32.mrf.mxu2  ;;  %v800_v21 = vadd.f32 %v3680_v56, %v686_v46  ;;  %v1365_v14 = vadd.s32 %v1363_v4, %v1357_v0  ;;  %v1383_v56 = vmul.u32 52429, %v1380_v5  ;;  %v1386_v46 = vmul.u32 52428, %v1381_v26  ;;  %v1734_v0 = vld [vmem:[#allocation2 + $0x2c] sm:$0xe] }
  0xfd   : > { %v1340_v36 = vadd.s32 %v1338_v27, %v1336_v16  ;;  %vm1366_vm11 = vc.u32 %v1364_v3, %v1360_v32  ;;  %v1359_v16 = vshrl.u32 %v1355_v37, 16  ;;  %v802_v27 = vadd.f32 %v3697_v17, %v688_v59 }
  0xfe   : > { %v1367_v23 = vsel %vm1366_vm11, 1, %v3413_v18  ;;  %v946_v37 = vadd.f32 %v3693_v9, %v3699_v19  ;;  %v948_v17 = vadd.f32 %v3712_v31, %v3722_v40  ;;  %v1389_v9 = vshll.u32 %v3785_v35, 16 }
  0xff   : > { %v1341_v51 = vadd.s32 %v1340_v36, %v1330_v24  ;;  %v446_v24 = vadd.f32 %v3682_v62, %v3686_v2  ;;  %v1369_v25 = vadd.s32 %v1367_v23, %v1365_v14  ;;  %v1387_v62 = vshll.u32 %v3782_v29, 16 }
 0x100   : > { %v672_v15 = vpop.f32.mrf.mxu3  ;;  %v947_v2 = vadd.f32 %v3703_v22, %v800_v21  ;;  %v3805_v22 = vadd.f32 %v3701_v20, %v946_v37  ;;  %v936_v31 = vpop.f32.mrf.mxu1  ;;  %v3814_v53 = vadd.s32 24, %v3730_v44  ;;  %v3822_v59 = vadd.f32 %v3724_v33, %v948_v17 }
 0x101   : > { %v1342_v61 = vadd.s32 %v1341_v51, %v1332_v54  ;;  %v3789_v36 = vadd.f32 %v3691_v8, %v446_v24  ;;  %v1361_v54 = vshrl.u32 %v3757_v60, 16  ;;  %v1370_v13 = vadd.s32 %v1369_v25, %v1359_v16  ;;  %v3286_v60 = vld [vmem:[%s4607_s3 + $0x1c] sm:$0xf] }
 0x102   : > { %v690_v45 = vadd.f32 %v672_v15, %v591_v6  ;;  %vm1391_vm14 = vc.u32 %v1383_v56, %v1387_v62  ;;  %v1393_v51 = vadd.s32 %v1387_v62, %v1383_v56  ;;  %v3817_v52 = vadd.f32 %v3707_v28, %v947_v2 }
 0x103   : > { %v3760_v50 = vpop.f32.mrf.mxu0  ;;  %v1343_v42 = vshrl.u32 %v1342_v61, 3  ;;  %v1392_v15 = vsel %vm1391_vm14, 1, %v3413_v18  ;;  %v1371_v32 = vadd.s32 %v1370_v13, %v1361_v54  ;;  %vm1732_vm9 = vsmask.f32 7942 }
 0x104   : > { %v1394_v3 = vadd.s32 %v1392_v15, %v1386_v46  ;;  %vm1395_vm10 = vc.u32 %v1393_v51, %v1389_v9  ;;  %v804_v61 = vadd.f32 %v3719_v38, %v690_v45  ;;  %vm3831_vm11 = vmand %vm1731_vm8, %vm1732_vm9  ;;  %v1388_v5 = vshrl.u32 %v3782_v29, 16 }
 0x105   : > { %v1344_v19 = vmul.u32 10, %v1343_v42  ;;  %v1735_v33 = vsel %vm3831_vm11, 0, %v1734_v0  ;;  %v1409_v21 = vand.u32 65535, %v3814_v53  ;;  %v950_v38 = vadd.f32 %v3741_v1, %v3739_v57 }
 0x106   : > { %1736 = vst [vmem:[#allocation2 + $0x2c] sm:$0xe] %v1735_v33  ;;  %v1390_v16 = vshrl.u32 %v3785_v35, 16  ;;  %vm1723_vm8 = vcmask 60416  }
 0x107   : > { %v3829_v28 = vsub.s32 %v3730_v44, %v1344_v19  ;;  %v1412_v23 = vmul.u32 52429, %v1409_v21  ;;  %v1413_v26 = vmul.u32 52428, %v1409_v21  ;;  %1724 = vst.msk [vmem:[#allocation2] sm:$0xf] %vm1723_vm8, %v3413_v18 }
 0x108   : > { %v675_v11 = vpop.f32.mrf.mxu3 }
 0x109   : > { %v691_v41 = vadd.f32 %v675_v11, %v3669_v34  ;;  %v593_v34 = vadd.f32 %v3675_v47, %v441_v10  ;;  %v949_v47 = vadd.f32 %v3726_v12, %v802_v27  ;;  %v1728_v12 = vld [vmem:[#allocation2 + $0x4] sm:$0x3]  ;;  %v1396_v10 = vsel %vm1395_vm10, 1, %v3413_v18 }
 0x10a   : > { %v1729_v20 = vsel %vm3808_vm15, 0, %v1728_v12  ;;  %v1372_v11 = vshrl.u32 %v1371_v32, 3  ;;  %v1398_v14 = vadd.s32 %v1396_v10, %v1394_v3  ;;  %v951_v27 = vadd.f32 %v3768_v48, %v804_v61  ;;  %v938_v48 = vpop.f32.mrf.mxu1 }
 0x10b   : > { %v805_v30 = vadd.f32 %v3728_v43, %v691_v41  ;;  %v3797_v43 = vpop.f32.mrf.mxu2  ;;  %v3801_v8 = vpop.f32.mrf.mxu0  ;;  %1730 = vst [vmem:[#allocation2 + $0x4] sm:$0x3] %v1729_v20  ;;  %v3825_v6 = vadd.f32 %v3733_v49, %v949_v47  ;;  %v1410_v49 = vshrl.u32 %v3814_v53, 16  ;;  %v3844_v41 = vadd.s32 32, %v3730_v44 }
 0x10c   : > { %vm1609_vm12 = vcmp.ne.s32.totalorder %v3829_v28, 0  ;;  %v1399_v1 = vadd.s32 %v1398_v14, %v1388_v5  ;;  %v1416_v62 = vshll.u32 %v1413_v26, 16  ;;  %v1373_v17 = vmul.u32 10, %v1372_v11 }
 0x10d   : > { %v1414_v24 = vmul.u32 52429, %v1410_v49  ;;  %v952_v25 = vadd.f32 %v936_v31, %v805_v30  ;;  %v1415_v37 = vmul.u32 52428, %v1410_v49  ;;  %v1438_v2 = vand.u32 65535, %v3844_v41 }
 0x10e   : > { %v1439_v13 = vshrl.u32 %v3844_v41, 16  ;;  %vm1619_vm14 = vcmp.lt.s32.totalorder %v3829_v28, 0  ;;  %v1400_v30 = vadd.s32 %v1399_v1, %v1390_v16  ;;  %vm1420_vm9 = vc.u32 %v1412_v23, %v1416_v62 }
 0x10f   : > { %v1418_v54 = vshll.u32 %v1414_v24, 16  ;;  %v1421_v45 = vsel %vm1420_vm9, 1, %v3413_v18  ;;  %v1441_v19 = vmul.u32 52429, %v1438_v2  ;;  %v1442_v31 = vmul.u32 52428, %v1438_v2  ;;  %vm3874_vm9 = vmand %vm1619_vm14, %vm1609_vm12 }
 0x110   : > { %v677_v40 = vpop.f32.mrf.mxu3  ;;  %v1401_v46 = vshrl.u32 %v1400_v30, 3  ;;  %v1423_v9 = vadd.s32 %v1421_v45, %v1415_v37  ;;  %v1417_v12 = vshrl.u32 %v1413_v26, 16  ;;  %v1443_v15 = vmul.u32 52429, %v1439_v13 }
 0x111   : > { %v692_v42 = vadd.f32 %v677_v40, %v593_v34  ;;  %v3861_v40 = vsub.s32 %v3744_v7, %v1373_v17  ;;  %v1445_v51 = vshll.u32 %v1442_v31, 16  ;;  %v3866_v20 = vadd.s32 40, %v3730_v44 }
 0x112   : > { %v1419_v32 = vshrl.u32 %v1414_v24, 16  ;;  %v1444_v61 = vmul.u32 52428, %v1439_v13  ;;  %v1402_v33 = vmul.u32 10, %v1401_v46  ;;  %v1447_v10 = vshll.u32 %v1443_v15, 16  ;;  %v941_v2 = vpop.f32.mrf.mxu1 }
 0x113   : > { %v1051_v29 = vpop.f32.mrf.mxu2  ;;  %v3849_v57 = vpop.f32.mrf.mxu0  ;;  %v806_v34 = vadd.f32 %v3737_v55, %v692_v42  ;;  %v1639_v55 = vadd.s32 10, %v3829_v28  ;;  %v1451_v21 = vadd.s32 %v1445_v51, %v1441_v19  ;;  %vm1610_vm2 = vcmp.ne.s32.totalorder %v3861_v40, 0 }
 0x114   : > { %vm1620_vm1 = vcmp.lt.s32.totalorder %v3861_v40, 0  ;;  %v3882_v16 = vadd.f32 %v3755_v39, %v950_v38  ;;  %v3887_v26 = vadd.f32 %v1051_v29, %v952_v25  ;;  %v1467_v42 = vand.u32 65535, %v3866_v20 }
 0x115   : > { %v953_v0 = vadd.f32 %v938_v48, %v806_v34  ;;  %v1640_v1 = vadd.s32 10, %v3861_v40  ;;  %vm3896_vm12 = vmand %vm1620_vm1, %vm1610_vm2  ;;  %v1446_v38 = vshrl.u32 %v1442_v31, 16  ;;  %vm1453_vm14 = vc.u32 %v1451_v21, %v1447_v10 }
 0x116   : > { %v1470_v13 = vmul.u32 52429, %v1467_v42  ;;  %v1471_v48 = vmul.u32 52428, %v1467_v42 }
 0x117   : > { %v1650_v34 = vsel %vm3896_vm12, %v1640_v1, %v3861_v40 }
 0x118   : > { %v680_v56 = vpop.f32.mrf.mxu3  ;;  %v1475_v10 = vshrl.u32 %v1471_v48, 16  ;;  %vm3951_vm5 = vcmp.lt.s32.totalorder %v1650_v34, 8 }
 0x119   : > { %v693_v35 = vadd.f32 %v680_v56, %v3684_v63  ;;  %v1422_v63 = vadd.s32 %v1416_v62, %v1412_v23  ;;  %v3885_v23 = vadd.f32 %v3797_v43, %v951_v27  ;;  %v1649_v56 = vsel %vm3874_vm9, %v1639_v55, %v3829_v28 }
 0x11a   : > { %v3901_v43 = vsub.s32 %v3766_v58, %v1402_v33  ;;  %v1468_v27 = vshrl.u32 %v3866_v20, 16  ;;  %v1448_v28 = vshrl.u32 %v1443_v15, 16  ;;  %vm3907_vm9 = vcmp.lt.s32.totalorder %v1649_v56, 8 }
 0x11b   : > { %v807_v47 = vadd.f32 %v3760_v50, %v693_v35  ;;  %vm1424_vm10 = vc.u32 %v1422_v63, %v1418_v54  ;;  %v1053_v49 = vpop.f32.mrf.mxu2  ;;  %v3889_v24 = vpop.f32.mrf.mxu0  ;;  %v1454_v35 = vsel %vm1453_vm14, 1, %v3413_v18  ;;  %v3915_v63 = vadd.s32 48, %v3730_v44 }
 0x11c   : > { %v1425_v50 = vsel %vm1424_vm10, 1, %v3413_v18  ;;  %vm1449_vm10 = vc.u32 %v1441_v19, %v1445_v51  ;;  %v3904_v25 = vadd.f32 %v1053_v49, %v953_v0  ;;  %v1472_v30 = vmul.u32 52429, %v1468_v27 }
 0x11d   : > { %v1427_v3 = vadd.s32 %v1425_v50, %v1423_v9  ;;  %v1450_v14 = vsel %vm1449_vm10, 1, %v3413_v18  ;;  %v954_v58 = vadd.f32 %v941_v2, %v807_v47  ;;  %vm1611_vm1 = vcmp.ne.s32.totalorder %v3901_v43, 0  ;;  %v3922_v47 = vld [vmem:[%s4606_s2] ss:$0 sm:$0xff] }
 0x11e   : > { %v1452_v62 = vadd.s32 %v1450_v14, %v1444_v61  ;;  %v1474_v19 = vshll.u32 %v1471_v48, 16  ;;  %v1476_v31 = vshll.u32 %v1472_v30, 16  ;;  %vm1621_vm2 = vcmp.lt.s32.totalorder %v3901_v43, 0 }
 0x11f   : > { %v1428_v11 = vadd.s32 %v1427_v3, %v1417_v12  ;;  %v1473_v15 = vmul.u32 52428, %v1468_v27  ;;  %v1496_v51 = vand.u32 65535, %v3915_v63  ;;  %v1497_v3 = vshrl.u32 %v3915_v63, 16  ;;  %vm3944_vm0 = vmand %vm1621_vm2, %vm1611_vm1 }
 0x120   : > { %v3868_v5 = vpop.f32.mrf.mxu3  ;;  %v1456_v54 = vadd.s32 %v1454_v35, %v1452_v62  ;;  %vm1478_vm10 = vc.u32 %v1470_v13, %v1474_v19  ;;  %v1480_v50 = vadd.s32 %v1474_v19, %v1470_v13  ;;  %v1477_v39 = vshrl.u32 %v1472_v30, 16 }
 0x121   : > { %v1429_v37 = vadd.s32 %v1428_v11, %v1419_v32  ;;  %v1479_v7 = vsel %vm1478_vm10, 1, %v3413_v18  ;;  %v3958_v1 = vmul.u32 52428, %v1496_v51  ;;  %v1502_v34 = vmul.u32 52428, %v1497_v3 }
 0x122   : > { %v1457_v9 = vadd.s32 %v1456_v54, %v1446_v38  ;;  %vm1482_vm6 = vc.u32 %v1480_v50, %v1476_v31  ;;  %v1481_v21 = vadd.s32 %v1479_v7, %v1473_v15 }
 0x123   : > { %v1430_v29 = vshrl.u32 %v1429_v37, 3  ;;  %v1056_v0 = vpop.f32.mrf.mxu2  ;;  %v3935_v61 = vpop.f32.mrf.mxu0  ;;  %v1483_v49 = vsel %vm1482_vm6, 1, %v3413_v18  ;;  %v3962_v37 = vadd.f32 %v3868_v5, %v3789_v36  ;;  %v1499_v5 = vmul.u32 52429, %v1496_v51 }
 0x124   : > { %v1458_v55 = vadd.s32 %v1457_v9, %v1448_v28  ;;  %v3949_v11 = vadd.f32 %v1056_v0, %v954_v58  ;;  %v1485_v38 = vadd.s32 %v1483_v49, %v1481_v21  ;;  %v3979_v28 = vmul.u32 52429, %v1497_v3 }
 0x125   : > { %v1431_v45 = vmul.u32 10, %v1430_v29  ;;  %v1503_v48 = vshll.u32 %v3958_v1, 16  ;;  %v1504_v9 = vshrl.u32 %v3958_v1, 16 }
 0x126   : > { %v1486_v13 = vadd.s32 %v1485_v38, %v1475_v10  ;;  %v1506_v49 = vshrl.u32 %v3979_v28, 16 }
 0x127   : > { %v3926_v40 = vsub.s32 %v3814_v53, %v1431_v45  ;;  %v1459_v53 = vshrl.u32 %v1458_v55, 3  ;;  %v3993_v45 = vadd.s32 56, %v3730_v44  ;;  %vm1507_vm10 = vc.u32 %v1499_v5, %v1503_v48 }
 0x128   : > { %v1151_v46 = vpop.f32.mrf.mxu3  ;;  %v1508_v51 = vsel %vm1507_vm10, 1, %v3413_v18  ;;  %v1509_v0 = vadd.s32 %v1503_v48, %v1499_v5  ;;  %v3230_v5 = vld [vmem:[%s4607_s3 + $0xc] sm:$0xf]  ;;  %v4044_v48 = vadd.f32 %v3801_v8, %v3962_v37 }
 0x129   : > { %v1176_v12 = vadd.f32 %v1151_v46, %v3805_v22  ;;  %v3931_v22 = vadd.s32 10, %v3901_v43  ;;  %vm1612_vm12 = vcmp.ne.s32.totalorder %v3926_v40, 0  ;;  %vm1622_vm14 = vcmp.lt.s32.totalorder %v3926_v40, 0 }
 0x12a   : > { %v3956_v42 = vadd.s32 10, %v3926_v40  ;;  %v1460_v56 = vmul.u32 10, %v1459_v53  ;;  %vm3968_vm6 = vmand %vm1622_vm14, %vm1612_vm12  ;;  %vm1966_vm12 = vcmask 64512  }
 0x12b   : > { %v1298_v32 = vadd.f32 %v3849_v57, %v1176_v12  ;;  %v1651_v29 = vsel %vm3944_vm0, %v3931_v22, %v3901_v43  ;;  %v1505_v12 = vshll.u32 %v3979_v28, 16  ;;  %v4002_v50 = vpop.f32.mrf.mxu0  ;;  %v1526_v28 = vshrl.u32 %v3993_v45, 16 }
 0x12c   : > { %v3977_v36 = vsub.s32 %v3844_v41, %v1460_v56  ;;  %v1652_v58 = vsel %vm3968_vm6, %v3956_v42, %v3926_v40  ;;  %v3224_v41 = vld [vmem:[%s4607_s3 + $0x8] sm:$0xf]  ;;  %v1525_v42 = vand.u32 65535, %v3993_v45 }
 0x12d   : > { %v1673_v33 = vadd.f32 %v3922_v47, %v1298_v32  ;;  %v2100_v46 = vsel %vm1982_vm7, %v3224_v41, 0  ;;  %v1865_v32 = vld [vmem:[#allocation2 + $0x4] sm:$0xe]  ;;  %vm1511_vm14 = vc.u32 %v1509_v0, %v1505_v12  ;;  %v3387_v12 = vld [vmem:[#allocation2] sm:$0xe] }
 0x12e   : > { %vm1613_vm1 = vcmp.ne.s32.totalorder %v3977_v36, 0  ;;  %2109 = vmatpush.bf16.msrb.mxu3 %v2100_v46  ;;  %vm1623_vm2 = vcmp.lt.s32.totalorder %v3977_v36, 0  ;;  %v4006_v53 = vadd.s32 10, %v3977_v36  ;;  %v1512_v2 = vsel %vm1511_vm14, 1, %v3413_v18 }
 0x12f   : > { %v1683_v62 = vmax.f32 %v1673_v33, 0.0  ;;  %v1510_v33 = vadd.s32 %v1508_v51, %v1502_v34  ;;  %v4056_v34 = vmul.u32 52428, %v1525_v42  ;;  %v1531_v51 = vmul.u32 52428, %v1526_v28 }
 0x130   : > { %v1153_v27 = vpop.f32.mrf.mxu3 }
 0x131   : > { %v1713_v35 = vsel %vm3907_vm9, %v1683_v62, 0.0  ;;  %v1177_v54 = vadd.f32 %v1153_v27, %v3817_v52  ;;  %v1487_v52 = vadd.s32 %v1486_v13, %v1477_v39  ;;  %vm1753_vm9 = vsmask.f32 5392 }
 0x132   : > { %v1743_v30 = vpack.c.bf16 %v1713_v35, %v1713_v35  ;;  %v1514_v27 = vadd.s32 %v1512_v2, %v1510_v33  ;;  %v2214_v13 = vsel %vm1982_vm7, %v3230_v5, 0  ;;  %vm4064_vm14 = vmor %vm1726_vm13, %vm1753_vm9  ;;  %v1533_v33 = vshrl.u32 %v4056_v34, 16 }
 0x133   : > { %v1299_v17 = vadd.f32 %v3889_v24, %v1177_v54  ;;  %v1488_v15 = vshrl.u32 %v1487_v52, 3  ;;  %2223 = vmatpush.bf16.msrb.mxu0 %v2214_v13 }
 0x134   : > { %v1756_v19 = vshrl.u32 %v1743_v30, 16  ;;  %v1759_v31 = vshll.u32 %v1743_v30, 16 }
 0x135   : > { %v1674_v40 = vadd.f32 %v3922_v47, %v1299_v17  ;;  %v1489_v7 = vmul.u32 10, %v1488_v15  ;;  %v4076_v15 = vmul.u32 52429, %v1526_v28 }
 0x136   : > { %v1758_v24 = vrot.slane %v1756_v19, 6  ;;  %v1761_v55 = vrot.slane %v1759_v31, 7  ;;  %v1283_v19 = vpop.f32.mrf.mxu0 }
 0x137   : > { %v1684_v3 = vmax.f32 %v1674_v40, 0.0  ;;  %v4014_v62 = vsub.s32 %v3866_v20, %v1489_v7  ;;  %v1528_v40 = vmul.u32 52429, %v1525_v42  ;;  %v4092_v42 = vadd.s32 64, %v3730_v44 }
 0x138   : > { %v1762_v10 = vor.u32 %v1761_v55, %v1758_v24  ;;  %v1156_v21 = vpop.f32.mrf.mxu3 }
 0x139   : > { %v1714_v56 = vsel %vm3951_vm5, %v1684_v3, 0.0  ;;  %v1178_v1 = vadd.f32 %v1156_v21, %v3822_v59  ;;  %vm4028_vm5 = vmand %vm1623_vm2, %vm1613_vm1  ;;  %vm1624_vm6 = vcmp.lt.s32.totalorder %v4014_v62, 0  ;;  %v4035_v4 = vadd.s32 10, %v4014_v62 }
 0x13a   : > { %v1866_v39 = vsel %vm3831_vm11, %v1762_v10, %v1865_v32  ;;  %v1744_v38 = vpack.c.bf16 %v1714_v56, %v1714_v56  ;;  %vm1614_vm11 = vcmp.ne.s32.totalorder %v4014_v62, 0  ;;  %vm4051_vm1 = vcmp.lt.s32.totalorder %v1651_v29, 8 }
 0x13b   : > { %1867 = vst [vmem:[#allocation2 + $0x4] sm:$0xe] %v1866_v39  ;;  %v1300_v14 = vadd.f32 %v3935_v61, %v1178_v1  ;;  %vm4037_vm10 = vmand %vm1624_vm6, %vm1614_vm11  ;;  %v1515_v61 = vadd.s32 %v1514_v27, %v1504_v9  ;;  %vm4058_vm2 = vcmp.lt.s32.totalorder %v1652_v58, 8  ;;  %v1763_v22 = vrot.slane %v1762_v10, 4 }
 0x13c   : > { %v1765_v20 = vshrl.u32 %v1744_v38, 16  ;;  %v1768_v35 = vshll.u32 %v1744_v38, 16  ;;  %v1653_v37 = vsel %vm4028_vm5, %v4006_v53, %v3977_v36  ;;  %v1654_v29 = vsel %vm4037_vm10, %v4035_v4, %v4014_v62 }
 0x13d   : > { %v1675_v41 = vadd.f32 %v3922_v47, %v1300_v14  ;;  %v1516_v8 = vadd.s32 %v1515_v61, %v1506_v49  ;;  %v1532_v36 = vshll.u32 %v4056_v34, 16  ;;  %v1534_v38 = vshll.u32 %v4076_v15, 16 }
 0x13e   : > { %v1767_v17 = vrot.slane %v1765_v20, 6  ;;  %v1770_v52 = vrot.slane %v1768_v35, 7  ;;  %v1535_v27 = vshrl.u32 %v4076_v15, 16  ;;  %vm4101_vm13 = vcmp.lt.s32.totalorder %v1653_v37, 8 }
 0x13f   : > { %v1685_v57 = vmax.f32 %v1675_v41, 0.0  ;;  %v1517_v31 = vshrl.u32 %v1516_v8, 3  ;;  %vm1536_vm0 = vc.u32 %v1528_v40, %v1532_v36  ;;  %v1554_v37 = vand.u32 65535, %v4092_v42 }
 0x140   : > { %v1771_v58 = vor.u32 %v1770_v52, %v1767_v17  ;;  %v1158_v9 = vpop.f32.mrf.mxu3  ;;  %v1537_v13 = vsel %vm1536_vm0, 1, %v3413_v18  ;;  %v1538_v17 = vadd.s32 %v1532_v36, %v1528_v40 }
 0x141   : > { %v1715_v24 = vsel %vm4051_vm1, %v1685_v57, 0.0  ;;  %v1179_v55 = vadd.f32 %v1158_v9, %v3825_v6  ;;  %v1518_v53 = vmul.u32 10, %v1517_v31  ;;  %v3258_v6 = vld [vmem:[%s4607_s3 + $0x14] sm:$0xf]  ;;  %v1539_v57 = vadd.s32 %v1537_v13, %v1531_v51 }
 0x142   : > { %v1772_v0 = vsel %vm4064_vm14, %v1763_v22, %v1771_v58  ;;  %v1745_v32 = vpack.c.bf16 %v1715_v24, %v1715_v24  ;;  %v3383_v3 = vld [vmem:[#allocation2] sm:$0xff]   ;;  %v2414_v2 = vsel %vm1982_vm7, %v3258_v6, 0  ;;  %v1773_v5 = vrot.slane %v1771_v58, 4 }
 0x143   : > { %v3386_v7 = vld [vmem:[#allocation2] sm:$0xf0]  ;;  %1868 = vst.msk [vmem:[#allocation2 + $0x8] sm:$0xf] %vm1723_vm8, %v1772_v0  ;;  %v1301_v10 = vadd.f32 %v4002_v50, %v1179_v55  ;;  %v1925_v21 = vshll.u32 %v3383_v3, 16  ;;  %3219 = vmatmul.msk.bf16.vlgmr.msra.gmra.mxu2 %vm1966_vm12, %v3383_v3  ;;  %v4096_v39 = vsub.s32 %v3915_v63, %v1518_v53  ;;  %v1923_v61 = vshrl.u32 %v3383_v3, 16 }
 0x144   : > { %v3388_v49 = vor.u32 %v3387_v12, %v3386_v7  ;;  %v1775_v56 = vshrl.u32 %v1745_v32, 16  ;;  %v1778_v1 = vshll.u32 %v1745_v32, 16  ;;  %2423 = vmatpush.bf16.msrb.mxu2 %v2414_v2  ;;  %v4110_v52 = vld [vmem:[#allocation2 + $0x4] sm:$0xe]  ;;  %v1285_v12 = vpop.f32.mrf.mxu0  ;;  %vm1540_vm6 = vc.u32 %v1538_v17, %v1534_v38 }
 0x145   : > { %v1676_v50 = vadd.f32 %v3922_v47, %v1301_v10  ;;  %v1927_v59 = vrot.slane %v1925_v21, 1  ;;  %vm1615_vm9 = vcmp.ne.s32.totalorder %v4096_v39, 0  ;;  %vm1625_vm5 = vcmp.lt.s32.totalorder %v4096_v39, 0 }
 0x146   : > { %v1777_v28 = vrot.slane %v1775_v56, 6  ;;  %v1780_v14 = vrot.slane %v1778_v1, 7  ;;  %v4105_v63 = vrot.slane %v3388_v49, 1  ;;  %v1645_v15 = vadd.s32 10, %v4096_v39  ;;  %vm4124_vm11 = vmand %vm1625_vm5, %vm1615_vm9 }
 0x147   : > { %v1686_v35 = vmax.f32 %v1676_v50, 0.0  ;;  %v4118_v31 = vor.u32 %v1927_v59, %v1923_v61  ;;  %v2170_v24 = vunpack.c.l.b16 %v4110_v52  ;;  %v1555_v55 = vshrl.u32 %v4092_v42, 16 }
 0x148   : > { %v1781_v30 = vor.u32 %v1780_v14, %v1777_v28  ;;  %v1161_v41 = vpop.f32.mrf.mxu3  ;;  %v1557_v53 = vmul.u32 52429, %v1554_v37  ;;  %v4136_v7 = vmul.u32 52428, %v1554_v37  ;;  %vm4143_vm1 = vcmp.lt.s32.totalorder %v1654_v29, 8 }
 0x149   : > { %v1716_v8 = vsel %vm4058_vm2, %v1686_v35, 0.0  ;;  %v1180_v22 = vadd.f32 %v1161_v41, %v3882_v16  ;;  %v3252_v16 = vld [vmem:[%s4607_s3 + $0x10] sm:$0xf]  ;;  %v1655_v49 = vsel %vm4124_vm11, %v1645_v15, %v4096_v39  ;;  %v4150_v56 = vmul.u32 52429, %v1555_v55 }
 0x14a   : > { %v1782_v58 = vsel %vm4064_vm14, %v1773_v5, %v1781_v30  ;;  %v1746_v9 = vpack.c.bf16 %v1716_v8, %v1716_v8  ;;  %v2335_v0 = vsel %vm1982_vm7, %v3252_v16, 0  ;;  %v1783_v1 = vrot.slane %v1781_v30, 4 }
 0x14b   : > { %1869 = vst.msk [vmem:[#allocation2 + $0xc] sm:$0xf] %vm1723_vm8, %v1782_v58  ;;  %v1302_v40 = vadd.f32 %v1283_v19, %v1180_v22  ;;  %v1541_v19 = vsel %vm1540_vm6, 1, %v3413_v18  ;;  %2344 = vmatpush.bf16.msrb.mxu1 %v2335_v0  ;;  %v1561_v54 = vshll.u32 %v4136_v7, 16  ;;  %v1560_v62 = vmul.u32 52428, %v1555_v55 }
 0x14c   : > { %v1785_v51 = vshrl.u32 %v1746_v9, 16  ;;  %v1788_v36 = vshll.u32 %v1746_v9, 16  ;;  %v1543_v3 = vadd.s32 %v1541_v19, %v1539_v57  ;;  %v1562_v4 = vshrl.u32 %v4136_v7, 16  ;;  %v1288_v17 = vpop.f32.mrf.mxu0 }
 0x14d   : > { %v1677_v32 = vadd.f32 %v3922_v47, %v1302_v40  ;;  %v4157_v29 = vadd.s32 72, %v3730_v44  ;;  %vm1565_vm10 = vc.u32 %v1557_v53, %v1561_v54  ;;  %v1563_v61 = vshll.u32 %v4150_v56, 16 }
 0x14e   : > { %v1787_v10 = vrot.slane %v1785_v51, 6  ;;  %v1790_v21 = vrot.slane %v1788_v36, 7  ;;  %v1544_v50 = vadd.s32 %v1543_v3, %v1533_v33  ;;  %v1566_v44 = vsel %vm1565_vm10, 1, %v3413_v18 }
 0x14f   : > { %v1687_v2 = vmax.f32 %v1677_v32, 0.0  ;;  %v1564_v58 = vshrl.u32 %v4150_v56, 16  ;;  %vm4182_vm2 = vcmp.lt.s32.totalorder %v1655_v49, 8  ;;  %v1568_v55 = vadd.s32 %v1566_v44, %v1560_v62 }
 0x150   : > { %v1791_v38 = vor.u32 %v1790_v21, %v1787_v10  ;;  %v1163_v5 = vpop.f32.mrf.mxu3  ;;  %v1545_v14 = vadd.s32 %v1544_v50, %v1535_v27  ;;  %v1567_v27 = vadd.s32 %v1561_v54, %v1557_v53  ;;  %v1583_v6 = vand.u32 65535, %v4157_v29 }
 0x151   : > { %v1717_v39 = vsel %vm4101_vm13, %v1687_v2, 0.0  ;;  %v1181_v28 = vadd.f32 %v1163_v5, %v3885_v23 }
 0x152   : > { %v1792_v34 = vsel %vm4064_vm14, %v1783_v1, %v1791_v38  ;;  %v1747_v33 = vpack.c.bf16 %v1717_v39, %v1717_v39  ;;  %v4164_v59 = vld [vmem:[#allocation2 + $0x8] sm:$0xff]  ;;  %v1546_v13 = vshrl.u32 %v1545_v14, 3  ;;  %vm1569_vm0 = vc.u32 %v1567_v27, %v1563_v61 }
 0x153   : > { %v4166_v35 = vld [vmem:[#allocation2 + $0x8] sm:$0xff]   ;;  %1870 = vst.msk [vmem:[#allocation2 + $0x10] sm:$0xf] %vm1723_vm8, %v1792_v34  ;;  %v1303_v20 = vadd.f32 %v1285_v12, %v1181_v28  ;;  %3220 = vmatmul.msk.bf16.gmra.mxu2 %vm1966_vm12, %v4164_v59  ;;  %v2074_v52 = vrot.slane %v4164_v59, 1  ;;  %v1930_v8 = vshll.u32 %v4164_v59, 16  ;;  %v1793_v51 = vrot.slane %v1791_v38, 4 }
 0x154   : > { %v2171_v23 = vunpack.c.l.b16 %v4166_v35  ;;  %v1795_v30 = vshrl.u32 %v1747_v33, 16  ;;  %v1798_v41 = vshll.u32 %v1747_v33, 16  ;;  %v1547_v57 = vmul.u32 10, %v1546_v13  ;;  %v1290_v33 = vpop.f32.mrf.mxu0 }
 0x155   : > { %v1678_v22 = vadd.f32 %v3922_v47, %v1303_v20  ;;  %v2075_v40 = vsel %vm997_vm4, %v4105_v63, %v2074_v52  ;;  %v1932_v46 = vrot.slane %v1930_v8, 1  ;;  %v1570_v32 = vsel %vm1569_vm0, 1, %v3413_v18 }
 0x156   : > { %v4179_v37 = vpack.c.b16 %v2171_v23, %v2170_v24  ;;  %v1797_v9 = vrot.slane %v1795_v30, 6  ;;  %v1800_v12 = vrot.slane %v1798_v41, 7  ;;  %3225 = vmatmul.msk.bf16.vlgmr.msrb.gmra.mxu3 %vm1966_vm12, %v2075_v40  ;;  %v1548_v24 = vsub.s32 %v3993_v45, %v1547_v57 }
 0x157   : > { %v1688_v16 = vmax.f32 %v1678_v22, 0.0  ;;  %v1933_v19 = vsel %vm489_vm3, %v4118_v31, %v1932_v46  ;;  %v1572_v56 = vadd.s32 %v1570_v32, %v1568_v55  ;;  %v1584_v1 = vshrl.u32 %v4157_v29, 16 }
 0x158   : > { %v1801_v36 = vor.u32 %v1800_v12, %v1797_v9  ;;  %v1166_v0 = vpop.f32.mrf.mxu3  ;;  %3214 = vmatmul.msk.bf16.vlgmr.msra.gmra.mxu1 %vm1966_vm12, %v1933_v19  ;;  %vm1616_vm13 = vcmp.ne.s32.totalorder %v1548_v24, 0  ;;  %vm1626_vm9 = vcmp.lt.s32.totalorder %v1548_v24, 0  ;;  %v1646_v31 = vadd.s32 10, %v1548_v24 }
 0x159   : > { %v1718_v3 = vsel %vm4143_vm1, %v1688_v16, 0.0  ;;  %v1182_v63 = vadd.f32 %v1166_v0, %v3887_v26  ;;  %vm4201_vm5 = vmand %vm1626_vm9, %vm1616_vm13  ;;  %v2187_v49 = vrot.slane %v4179_v37, 1  ;;  %v1934_v38 = vshrl.u32 %v4164_v59, 16 }
 0x15a   : > { %v1802_v45 = vsel %vm4064_vm14, %v1793_v51, %v1801_v36  ;;  %v1748_v53 = vpack.c.bf16 %v1718_v3, %v1718_v3  ;;  %v4205_v21 = vld [vmem:[#allocation2 + $0xc] sm:$0xff]  ;;  %v1803_v5 = vrot.slane %v1801_v36, 4  ;;  %v1656_v39 = vsel %vm4201_vm5, %v1646_v31, %v1548_v24 }
 0x15b   : > { %1871 = vst.msk [vmem:[#allocation2 + $0x14] sm:$0xf] %vm1723_vm8, %v1802_v45  ;;  %v1304_v26 = vadd.f32 %v1288_v17, %v1182_v63  ;;  %v2188_v54 = vrot.slane %v4205_v21, 1  ;;  %v1573_v28 = vadd.s32 %v1572_v56, %v1562_v4  ;;  %v4221_v44 = vmul.u32 52428, %v1583_v6 }
 0x15c   : > { %v1805_v2 = vshrl.u32 %v1748_v53, 16  ;;  %v1808_v50 = vshll.u32 %v1748_v53, 16  ;;  %v1586_v27 = vmul.u32 52429, %v1583_v6  ;;  %v4224_v30 = vmul.u32 52429, %v1584_v1 }
 0x15d   : > { %v1679_v62 = vadd.f32 %v3922_v47, %v1304_v26  ;;  %v2189_v61 = vsel %vm997_vm4, %v2187_v49, %v2188_v54  ;;  %v1574_v13 = vadd.s32 %v1573_v28, %v1564_v58  ;;  %vm4226_vm11 = vcmp.lt.s32.totalorder %v1656_v39, 8  ;;  %v943_v26 = vpop.f32.mrf.mxu1 }
 0x15e   : > { %v1807_v14 = vrot.slane %v1805_v2, 6  ;;  %v1810_v34 = vrot.slane %v1808_v50, 7  ;;  %3247 = vmatmul.msk.bf16.vlgmr.msrb.gmra.mxu0 %vm1966_vm12, %v2189_v61  ;;  %v1936_v4 = vor.u32 %v1934_v38, %v1932_v46  ;;  %v1590_v8 = vshll.u32 %v4221_v44, 16 }
 0x15f   : > { %v1689_v20 = vmax.f32 %v1679_v62, 0.0  ;;  %v1575_v9 = vshrl.u32 %v1574_v13, 3  ;;  %v1592_v58 = vshll.u32 %v4224_v30, 16  ;;  %v1589_v55 = vmul.u32 52428, %v1584_v1  ;;  %v1293_v1 = vpop.f32.mrf.mxu0  ;;  %v1058_v13 = vpop.f32.mrf.mxu2 }
 0x160   : > { %v1811_v41 = vor.u32 %v1810_v34, %v1807_v14  ;;  %v1168_v17 = vpop.f32.mrf.mxu3  ;;  %vm1594_vm6 = vc.u32 %v1586_v27, %v1590_v8  ;;  %v1596_v15 = vadd.s32 %v1590_v8, %v1586_v27  ;;  %v1591_v39 = vshrl.u32 %v4221_v44, 16 }
 0x161   : > { %v1719_v22 = vsel %vm4182_vm2, %v1689_v20, 0.0  ;;  %v1183_v57 = vadd.f32 %v1168_v17, %v3904_v25  ;;  %v1576_v51 = vmul.u32 10, %v1575_v9  ;;  %v1595_v63 = vsel %vm1594_vm6, 1, %v3413_v18 }
 0x162   : > { %v1812_v12 = vsel %vm4064_vm14, %v1803_v5, %v1811_v41  ;;  %v1813_v40 = vrot.slane %v1811_v41, 4  ;;  %v1749_v16 = vpack.c.bf16 %v1719_v22, %v1719_v22  ;;  %v4237_v24 = vld [vmem:[#allocation2 + $0x10] sm:$0xff]  ;;  %vm4247_vm1 = vc.u32 %v1596_v15, %v1592_v58 }
 0x163   : > { %1872 = vst.msk [vmem:[#allocation2 + $0x18] sm:$0xf] %vm1723_vm8, %v1812_v12  ;;  %v1305_v46 = vadd.f32 %v1290_v33, %v1183_v57  ;;  %3221 = vmatmul.msk.bf16.gmra.mxu2 %vm1966_vm12, %v4237_v24  ;;  %v2076_v25 = vrot.slane %v4237_v24, 1  ;;  %v1938_v19 = vshll.u32 %v4237_v24, 16  ;;  %v1577_v3 = vsub.s32 %v4092_v42, %v1576_v51 }
 0x164   : > { %v1815_v36 = vshrl.u32 %v1749_v16, 16  ;;  %v1818_v0 = vshll.u32 %v1749_v16, 16  ;;  %v1599_v38 = vsel %vm4247_vm1, 1, %v3413_v18  ;;  %v955_v28 = vadd.f32 %v943_v26, %v4044_v48 }
 0x165   : > { %v1680_v32 = vadd.f32 %v3922_v47, %v1305_v46  ;;  %v2077_v31 = vsel %vm997_vm4, %v2074_v52, %v2076_v25  ;;  %v4256_v6 = vrot.slane %v1938_v19, 1  ;;  %vm1617_vm10 = vcmp.ne.s32.totalorder %v1577_v3, 0 }
 0x166   : > { %v1817_v53 = vrot.slane %v1815_v36, 6  ;;  %v1820_v10 = vrot.slane %v1818_v0, 7  ;;  %vm1627_vm2 = vcmp.lt.s32.totalorder %v1577_v3, 0  ;;  %v1647_v42 = vadd.s32 10, %v1577_v3  ;;  %3226 = vmatmul.msk.bf16.gmra.mxu3 %vm1966_vm12, %v2077_v31 }
 0x167   : > { %v1690_v49 = vmax.f32 %v1680_v32, 0.0  ;;  %vm4259_vm0 = vmand %vm1627_vm2, %vm1617_vm10  ;;  %v1941_v59 = vsel %vm489_vm3, %v1936_v4, %v4256_v6  ;;  %v1597_v52 = vadd.s32 %v1595_v63, %v1589_v55  ;;  %v1070_v22 = vadd.f32 %v1058_v13, %v955_v28  ;;  %v1295_v15 = vpop.f32.mrf.mxu0 }
 0x168   : > { %v1821_v56 = vor.u32 %v1820_v10, %v1817_v53  ;;  %v1171_v2 = vpop.f32.mrf.mxu3  ;;  %3215 = vmatmul.msk.bf16.gmra.mxu1 %vm1966_vm12, %v1941_v59  ;;  %v1657_v61 = vsel %vm4259_vm0, %v1647_v42, %v1577_v3  ;;  %v1942_v19 = vshrl.u32 %v4237_v24, 16  ;;  %v2267_v32 = vshrl.u32 %v4179_v37, 16 }
 0x169   : > { %v1720_v5 = vsel %vm4226_vm11, %v1690_v49, 0.0  ;;  %v1184_v62 = vadd.f32 %v1171_v2, %v3949_v11  ;;  %v1593_v11 = vshrl.u32 %v4224_v30, 16  ;;  %v1601_v20 = vadd.s32 %v1599_v38, %v1597_v52 }
 0x16a   : > { %v1822_v14 = vsel %vm4064_vm14, %v1813_v40, %v1821_v56  ;;  %v1750_v34 = vpack.c.bf16 %v1720_v5, %v1720_v5  ;;  %v4276_v33 = vld [vmem:[#allocation2 + $0x14] sm:$0xff]  ;;  %vm1667_vm13 = vcmp.lt.s32.totalorder %v1657_v61, 8  ;;  %v1823_v9 = vrot.slane %v1821_v56, 4 }
 0x16b   : > { %1873 = vst.msk [vmem:[#allocation2 + $0x1c] sm:$0xf] %vm1723_vm8, %v1822_v14  ;;  %v1306_v18 = vadd.f32 %v1293_v1, %v1184_v62  ;;  %v2190_v48 = vrot.slane %v4276_v33, 1  ;;  %v1602_v17 = vadd.s32 %v1601_v20, %v1591_v39  ;;  %v1944_v26 = vor.u32 %v1942_v19, %v4256_v6 }
 0x16c   : > { %v1825_v27 = vshrl.u32 %v1750_v34, 16  ;;  %v1828_v44 = vshll.u32 %v1750_v34, 16  ;;  %v2270_v49 = vshll.u32 %v4179_v37, 16  ;;  %v2269_v6 = vrot.slane %v2267_v32, 1  ;;  %v2696_v32 = vld [vmem:[#allocation2 + $0x8] sm:$0x8] }
 0x16d   : > { %v1681_v41 = vadd.f32 %v3922_v47, %v1306_v18  ;;  %v2191_v8 = vsel %vm997_vm4, %v2188_v54, %v2190_v48  ;;  %v1603_v57 = vadd.s32 %v1602_v17, %v1593_v11  ;;  %v2275_v24 = vshrl.u32 %v4205_v21, 16 }
 0x16e   : > { %v1827_v7 = vrot.slane %v1825_v27, 6  ;;  %v1830_v4 = vrot.slane %v1828_v44, 7  ;;  %3248 = vmatmul.msk.bf16.gmra.mxu0 %vm1966_vm12, %v2191_v8  ;;  %v2272_v38 = vrot.slane %v2270_v49, 2  ;;  %vm4658_vm1 = vsmask.f32 6400 }
 0x16f   : > { %v1691_v30 = vmax.f32 %v1681_v41, 0.0  ;;  %v1604_v55 = vshrl.u32 %v1603_v57, 3  ;;  %v2277_v28 = vrot.slane %v2275_v24, 1  ;;  %v2287_v8 = vshll.u32 %v4276_v33, 16  ;;  %v2381_v49 = vld [vmem:[#allocation2 + $0x4] sm:$0xc] }
 0x170   : > { %v1831_v58 = vor.u32 %v1830_v4, %v1827_v7  ;;  %v1173_v12 = vpop.f32.mrf.mxu3  ;;  %v2273_v61 = vor.u32 %v2272_v38, %v2269_v6  ;;  %v2284_v7 = vshrl.u32 %v4276_v33, 16  ;;  %v3264_v4 = vld [vmem:[%s4607_s3 + $0x18] sm:$0xf]  ;;  %vm4659_vm10 = vcmask 1041408  }
 0x171   : > { %v1721_v40 = vsel %vm1667_vm13, %v1691_v30, 0.0  ;;  %v1185_v16 = vadd.f32 %v1173_v12, %v1070_v22  ;;  %v1605_v0 = vmul.u32 10, %v1604_v55  ;;  %v2485_v43 = vunpack.c.h.b16 %v4166_v35 }
 0x172   : > { %v1832_v46 = vsel %vm4064_vm14, %v1823_v9, %v1831_v58  ;;  %v1751_v51 = vpack.c.bf16 %v1721_v40, %v1721_v40  ;;  %v4292_v36 = vld [vmem:[#allocation2 + $0x18] sm:$0xff]  ;;  %v2286_v9 = vrot.slane %v2284_v7, 1  ;;  %v2289_v40 = vrot.slane %v2287_v8, 2 }
 0x173   : > { %1874 = vst.msk [vmem:[#allocation2 + $0x20] sm:$0xf] %vm1723_vm8, %v1832_v46  ;;  %v1307_v54 = vadd.f32 %v1295_v15, %v1185_v16  ;;  %3222 = vmatmul.msk.bf16.gmra.mxu2 %vm1966_vm12, %v4292_v36  ;;  %v2078_v45 = vrot.slane %v4292_v36, 1  ;;  %v1946_v53 = vshll.u32 %v4292_v36, 16  ;;  %v1606_v10 = vsub.s32 %v4157_v29, %v1605_v0  ;;  %v2786_v15 = vld [vmem:[%s4609_s5] sm:$0x3] }
 0x174   : > { %v1835_v3 = vshrl.u32 %v1751_v51, 16  ;;  %v1838_v63 = vshll.u32 %v1751_v51, 16  ;;  %v1950_v12 = vshrl.u32 %v4292_v36, 16  ;;  %v2842_v0 = vsel %vm4659_vm10, %v2786_v15, 0 }
 0x175   : > { %v1682_v31 = vadd.f32 %v3922_v47, %v1307_v54  ;;  %v2079_v1 = vsel %vm997_vm4, %v2076_v25, %v2078_v45  ;;  %v1948_v2 = vrot.slane %v1946_v53, 1  ;;  %vm1618_vm9 = vcmp.ne.s32.totalorder %v1606_v10, 0  ;;  %2851 = vmatpush.bf16.msra.mxu2 %v2842_v0  ;;  %v2460_v0 = vld [vmem:[#allocation2 + $0x8] sm:$0xc] }
 0x176   : > { %v1837_v42 = vrot.slane %v1835_v3, 6  ;;  %v1840_v56 = vrot.slane %v1838_v63, 7  ;;  %vm1628_vm5 = vcmp.lt.s32.totalorder %v1606_v10, 0  ;;  %v1648_v50 = vadd.s32 10, %v1606_v10  ;;  %3227 = vmatmul.msk.bf16.gmra.mxu3 %vm1966_vm12, %v2079_v1 }
 0x177   : > { %v1692_v59 = vmax.f32 %v1682_v31, 0.0  ;;  %v1833_v47 = vrot.slane %v1831_v58, 4  ;;  %vm1638_vm11 = vmand %vm1628_vm5, %vm1618_vm9  ;;  %v1949_v37 = vsel %vm489_vm3, %v1944_v26, %v1948_v2  ;;  %v2278_v25 = vshll.u32 %v4205_v21, 16  ;;  %v1877_v58 = vld [vmem:[#allocation2 + $0x2c] sm:$0x3]  ;;  %v4360_v31 = vld [vmem:[#allocation2 + $0x10] sm:$0xff] }
 0x178   : > { %v1841_v29 = vor.u32 %v1840_v56, %v1837_v42  ;;  %v1658_v52 = vsel %vm1638_vm11, %v1648_v50, %v1606_v10  ;;  %3216 = vmatmul.msk.bf16.gmra.mxu1 %vm1966_vm12, %v1949_v37  ;;  %v1952_v54 = vor.u32 %v1950_v12, %v1948_v2  ;;  %v2290_v19 = vor.u32 %v2289_v40, %v2286_v9  ;;  %v3292_v2 = vld [vmem:[%s4607_s3 + $0x20] sm:$0xf]  ;;  %vm4665_vm5 = vmmov %vm4658_vm1 }
 0x179   : > { %vm1668_vm6 = vcmp.lt.s32.totalorder %v1658_v52, 8  ;;  %v2280_v14 = vrot.slane %v2278_v25, 2  ;;  %v2650_v42 = vsel %vm1982_vm7, %v3286_v60, 0  ;;  %v2700_v1 = vunpack.c.l.b16 %v2696_v32  ;;  %v4382_v25 = vld [vmem:[#allocation2 + $0x18] sm:$0xff] }
 0x17a   : > { %v1842_v5 = vsel %vm4064_vm14, %v1833_v47, %v1841_v29  ;;  %v4317_v62 = vld [vmem:[#allocation2 + $0x1c] sm:$0xff]  ;;  %v1722_v39 = vsel %vm1668_vm6, %v1692_v59, 0.0  ;;  %v1843_v22 = vrot.slane %v1841_v29, 4  ;;  %2659 = vmatpush.bf16.msra.mxu0 %v2650_v42  ;;  %v1740_v59 = vld [vmem:[#allocation2 + $0x30] sm:$0xf]  ;;  %v2729_v47 = vsel %vm1982_vm7, %v3292_v2, 0 }
 0x17b   : > { %1875 = vst.msk [vmem:[#allocation2 + $0x24] sm:$0xf] %vm1723_vm8, %v1842_v5  ;;  %v1752_v34 = vpack.c.bf16 %v1722_v39, %v1722_v39  ;;  %v2192_v18 = vrot.slane %v4317_v62, 1  ;;  %v2281_v11 = vor.u32 %v2280_v14, %v2277_v28  ;;  %v2293_v10 = vshrl.u32 %v4317_v62, 16  ;;  %2738 = vmatpush.bf16.msra.mxu1 %v2729_v47 }
 0x17c   : > { %v2296_v36 = vshll.u32 %v4317_v62, 16  ;;  %v2701_v29 = vpack.c.b16 %v2485_v43, %v2700_v1  ;;  %v2385_v37 = vunpack.c.l.b16 %v2381_v49  ;;  %v2703_v52 = vrot.slane %v4360_v31, 3 }
 0x17d   : > { %v1845_v20 = vshrl.u32 %v1752_v34, 16  ;;  %v1848_v13 = vshll.u32 %v1752_v34, 16  ;;  %v2193_v27 = vsel %vm997_vm4, %v2190_v48, %v2192_v18  ;;  %v4328_v44 = vsel %vm4658_vm1, %v2273_v61, %v2281_v11 }
 0x17e   : > { %3249 = vmatmul.msk.bf16.gmra.mxu0 %vm1966_vm12, %v2193_v27  ;;  %v2528_v48 = vsel %vm1982_vm7, %v3264_v4, 0  ;;  %v2295_v56 = vrot.slane %v2293_v10, 1  ;;  %v2298_v50 = vrot.slane %v2296_v36, 2  ;;  %v2702_v39 = vrot.slane %v2701_v29, 3  ;;  %vm4661_vm7 = vmmov %vm4658_vm1 }
 0x17f   : > { %v1847_v41 = vrot.slane %v1845_v20, 6  ;;  %v1850_v17 = vrot.slane %v1848_v13, 7  ;;  %2537 = vmatpush.bf16.msra.mxu3 %v2528_v48  ;;  %v2386_v28 = vpack.c.b16 %v2171_v23, %v2385_v37  ;;  %vm4662_vm0 = vcmask 1044480  }
 0x180   : > { %v2299_v6 = vor.u32 %v2298_v50, %v2295_v56  ;;  %v2388_v20 = vrot.slane %v4205_v21, 2  ;;  %vm4663_vm13 = vmmov %vm4662_vm0  ;;  %vm4664_vm9 = vcmask 1045504   ;;  %v2502_v60 = vrot.slane %v4360_v31, 2 }
 0x181   : > { %v1851_v30 = vor.u32 %v1850_v17, %v1847_v41  ;;  %v2705_v41 = vrot.slane %v4382_v25, 3  ;;  %v2387_v23 = vrot.slane %v2386_v28, 2  ;;  %vm4667_vm11 = vmmov %vm4664_vm9  ;;  %v2590_v42 = vshrl.u32 %v4360_v31, 16 }
 0x182   : > { %v4335_v57 = vld [vmem:[#allocation2 + $0x20] sm:$0xff]  ;;  %v4387_v34 = vsel %vm4661_vm7, %v2290_v19, %v2299_v6  ;;  %v2593_v35 = vshll.u32 %v4360_v31, 16  ;;  %vm4669_vm6 = vmmov %vm4662_vm0  ;;  %vm2580_vm10 = vsmask.f32 5376  ;;  %v2392_v28 = vrot.slane %v4317_v62, 2 }
 0x183   : > { %v1852_v16 = vsel %vm4064_vm14, %v1843_v22, %v1851_v30  ;;  %v1853_v55 = vrot.slane %v1851_v30, 4  ;;  %3223 = vmatmul.msk.bf16.gmra.mxu2 %vm1966_vm12, %v4335_v57  ;;  %v2080_v46 = vrot.slane %v4335_v57, 1  ;;  %v1954_v51 = vshll.u32 %v4335_v57, 16  ;;  %v4419_v32 = vld [vmem:[#allocation2 + $0x20] sm:$0xff] }
 0x184   : > { %1876 = vst.msk [vmem:[#allocation2 + $0x28] sm:$0xf] %vm1723_vm8, %v1852_v16  ;;  %vm1738_vm14 = vsmask.f32 3328  ;;  %v4402_v30 = vsel %vm4663_vm13, %v2703_v52, %v2705_v41  ;;  %v2389_v21 = vsel %vm4664_vm9, %v2387_v23, %v2388_v20  ;;  %v1958_v48 = vshrl.u32 %v4335_v57, 16 }
 0x185   : > { %v1878_v3 = vsel %vm3808_vm15, %v1853_v55, %v1877_v58  ;;  %v2081_v63 = vsel %vm997_vm4, %v2078_v45, %v2080_v46  ;;  %v1956_v53 = vrot.slane %v1954_v51, 1  ;;  %vm4660_vm15 = vmmov %vm4658_vm1  ;;  %v2484_v57 = vunpack.c.l.b16 %v2460_v0 }
 0x186   : > { %1879 = vst [vmem:[#allocation2 + $0x2c] sm:$0x3] %v1878_v3  ;;  %3228 = vmatmul.msk.bf16.gmra.mxu3 %vm1966_vm12, %v2081_v63  ;;  %v4366_v26 = vsel %vm4660_vm15, %v2281_v11, %v2290_v19  ;;  %vm1739_vm2 = vmand %vm1723_vm8, %vm1738_vm14  ;;  %v4391_v11 = vsel %vm4662_vm0, %v2702_v39, %v2703_v52  ;;  %v2707_v10 = vrot.slane %v4419_v32, 3  ;;  %v2595_v47 = vrot.slane %v2593_v35, 3 }
 0x187   : > { %v1957_v45 = vsel %vm489_vm3, %v1952_v54, %v1956_v53  ;;  %v1741_v5 = vsel %vm1739_vm2, 0, %v1740_v59  ;;  %v1960_v16 = vor.u32 %v1958_v48, %v1956_v53  ;;  %v2495_v53 = vpack.c.b16 %v2485_v43, %v2484_v57  ;;  %vm4670_vm1 = vmmov %vm4662_vm0 }
 0x188   : > { %3217 = vmatmul.msk.bf16.gmra.mxu1 %vm1966_vm12, %v1957_v45  ;;  %1742 = vst [vmem:[#allocation2 + $0x30] sm:$0xf] %v1741_v5  ;;  %v2592_v59 = vrot.slane %v2590_v42, 2 }
 0x189   : > { %v2582_v56 = vshrl.u32 %v2495_v53, 16  ;;  %v2585_v1 = vshll.u32 %v2495_v53, 16 }
 0x18a   : > { %v2596_v52 = vor.u32 %v2595_v47, %v2592_v59 }
 0x18b   : > { %v4380_v38 = vld [vmem:[#allocation2 + $0x24] sm:$0xff]  ;;  %v2584_v29 = vrot.slane %v2582_v56, 2  ;;  %v2587_v37 = vrot.slane %v2585_v1, 3 }
 0x18c   : > { %v1891_v24 = vld [vmem:[#allocation2 + $0x28] sm:$0x1]  ;;  %v2194_v61 = vrot.slane %v4380_v38, 1  ;;  %v2302_v8 = vshrl.u32 %v4380_v38, 16  ;;  %v2305_v22 = vshll.u32 %v4380_v38, 16 }
 0x18d   : > { %v1915_v14 = vunpack.c.l.b16 %v1891_v24  ;;  %v2156_v7 = vld [vmem:[#allocation2 + $0x2c] sm:$0x1]  ;;  %v2588_v39 = vor.u32 %v2587_v37, %v2584_v29 }
 0x18e   : > { %v2195_v27 = vsel %vm997_vm4, %v2192_v18, %v2194_v61  ;;  %v2180_v9 = vunpack.c.l.b16 %v2156_v7  ;;  %v2304_v58 = vrot.slane %v2302_v8, 1  ;;  %v2307_v12 = vrot.slane %v2305_v22, 2  ;;  %v4436_v2 = vld [vmem:[#allocation2 + $0x28] sm:$0xff] }
 0x18f   : > { %v1921_v13 = vpack.c.b16 %v1915_v14, %v1915_v14  ;;  %3250 = vmatmul.msk.bf16.gmra.mxu0 %vm1966_vm12, %v2195_v27  ;;  %v2574_v3 = vld [vmem:[#allocation2 + $0x30] sm:$0x7]  ;;  %v2597_v14 = vsel %vm2580_vm10, %v2588_v39, %v2596_v52  ;;  %v2608_v8 = vshrl.u32 %v4419_v32, 16  ;;  %v2611_v22 = vshll.u32 %v4419_v32, 16 }
 0x190   : > { %v4410_v55 = vor.u32 %v2307_v12, %v2304_v58  ;;  %v2186_v15 = vpack.c.b16 %v2180_v9, %v2180_v9  ;;  %v2578_v36 = vunpack.c.l.b16 %v2574_v3  ;;  %v3377_v3 = vld [vmem:[%s3479_s10 + $0x94] sm:$0xf0] }
 0x191   : > { %v1962_v17 = vshll.u32 %v1921_v13, 16  ;;  %v2082_v4 = vrot.slane %v1921_v13, 1  ;;  %v2602_v13 = vshll.u32 %v4382_v25, 16  ;;  %v2613_v9 = vrot.slane %v2611_v22, 3 }
 0x192   : > { %v4416_v54 = vsel %vm4665_vm5, %v2299_v6, %v4410_v55  ;;  %v2196_v19 = vrot.slane %v2186_v15, 1  ;;  %v4438_v50 = vpack.c.b16 %v2578_v36, %v2578_v36  ;;  %v2709_v6 = vrot.slane %v4436_v2, 3 }
 0x193   : > { %3259 = vmatmul.msk.bf16.vlgmr.msrb.gmra.mxu2 %vm1966_vm12, %v2389_v21  ;;  %v1964_v18 = vrot.slane %v1962_v17, 1  ;;  %v2083_v40 = vsel %vm997_vm4, %v2080_v46, %v2082_v4  ;;  %v2390_v46 = vrot.slane %v4276_v33, 2  ;;  %v2501_v33 = vrot.slane %v2495_v53, 2  ;;  %v2260_v21 = vld [vmem:[#allocation2 + $0x2c] sm:$0x3] }
 0x194   : > { %v2197_v63 = vsel %vm997_vm4, %v2194_v61, %v2196_v19  ;;  %vm4668_vm4 = vmmov %vm4664_vm9  ;;  %v2711_v31 = vrot.slane %v4438_v50, 3  ;;  %v4446_v24 = vsel %vm4669_vm6, %v2707_v10, %v2709_v6  ;;  %v2604_v62 = vrot.slane %v2602_v13, 3 }
 0x195   : > { %v1965_v51 = vsel %vm489_vm3, %v1960_v16, %v1964_v18  ;;  %vm4666_vm3 = vmmov %vm4662_vm0  ;;  %v2391_v49 = vsel %vm4667_vm11, %v2388_v20, %v2390_v46  ;;  %v2503_v43 = vsel %vm4668_vm4, %v2501_v33, %v2502_v60  ;;  %v2599_v20 = vshrl.u32 %v4382_v25, 16 }
 0x196   : > { %3229 = vmatmul.msk.bf16.gmra.mxu3 %vm1966_vm12, %v2083_v40  ;;  %v4429_v45 = vsel %vm4666_vm3, %v2705_v41, %v2707_v10  ;;  %v4449_v5 = vsel %vm4670_vm1, %v2709_v6, %v2711_v31  ;;  %vm4671_vm15 = vmmov %vm4668_vm4  ;;  %v2394_v17 = vrot.slane %v4380_v38, 2  ;;  %v2506_v4 = vrot.slane %v4419_v32, 2  ;;  %v2470_v10 = vld [vmem:[#allocation2 + $0x30] sm:$0x3] }
 0x197   : > { %v2393_v61 = vsel %vm4671_vm15, %v2390_v46, %v2392_v28  ;;  %vm4672_vm14 = vmmov %vm4668_vm4  ;;  %v2601_v41 = vrot.slane %v2599_v20, 2  ;;  %v2264_v38 = vunpack.c.l.b16 %v2260_v21  ;;  %v2610_v18 = vrot.slane %v2608_v8, 2  ;;  %v3300_v46 = vld [vmem:[%s3479_s10 + $0x94] sm:$0xc] }
 0x198   : > { %3218 = vmatmul.msk.bf16.gmra.mxu1 %vm1966_vm12, %v1965_v51  ;;  %vm4673_vm2 = vmmov %vm4668_vm4  ;;  %v2508_v15 = vrot.slane %v4436_v2, 2  ;;  %v2617_v19 = vshrl.u32 %v4436_v2, 16  ;;  %v2620_v32 = vshll.u32 %v4436_v2, 16  ;;  %v3301_v33 = vor.u32 %v3377_v3, %v3300_v46 }
 0x199   : > { %v2605_v23 = vor.u32 %v2604_v62, %v2601_v41  ;;  %vm4674_vm7 = vmmov %vm4673_vm2  ;;  %v2265_v58 = vpack.c.b16 %v2264_v38, %v2264_v38  ;;  %v2614_v12 = vor.u32 %v2613_v9, %v2610_v18  ;;  %v2494_v35 = vunpack.c.l.b16 %v2470_v10 }
 0x19a   : > { %vm4675_vm0 = vmmov %vm4673_vm2  ;;  %v2622_v36 = vrot.slane %v2620_v32, 3  ;;  %v2815_v29 = vrot.slane %v3301_v33, 2  ;;  %vm4678_vm5 = vcmask 31744   ;;  %v2626_v62 = vshrl.u32 %v4438_v50, 16 }
 0x19b   : > { %v2606_v7 = vsel %vm2580_vm10, %v2596_v52, %v2605_v23  ;;  %v2396_v16 = vrot.slane %v2265_v58, 2  ;;  %v2615_v51 = vsel %vm2580_vm10, %v2605_v23, %v2614_v12  ;;  %vm4676_vm13 = vmmov %vm4675_vm0  ;;  %v2311_v2 = vshrl.u32 %v2265_v58, 16 }
 0x19c   : > { %v2509_v57 = vsel %vm4676_vm13, %v2506_v4, %v2508_v15  ;;  %v2314_v59 = vshll.u32 %v2265_v58, 16  ;;  %v2500_v31 = vpack.c.b16 %v2494_v35, %v2494_v35  ;;  %vm4677_vm9 = vmmov %vm4675_vm0  ;;  %v2629_v23 = vshll.u32 %v4438_v50, 16 }
 0x19d   : > { %v2397_v0 = vsel %vm4675_vm0, %v2394_v17, %v2396_v16  ;;  %vm4679_vm3 = vmmov %vm4675_vm0  ;;  %vm4680_vm11 = vsmask.f32 6400  ;;  %v2628_v21 = vrot.slane %v2626_v62, 2 }
 0x19e   : > { %v2510_v20 = vrot.slane %v2500_v31, 2  ;;  %vm4681_vm4 = vmmov %vm4675_vm0 }
 0x19f   : > { %3251 = vmatmul.msk.bf16.gmra.mxu0 %vm1966_vm12, %v2197_v63  ;;  %vm4682_vm6 = vmmov %vm4678_vm5 }
 0x1a0   : > { %vm4683_vm1 = vmmov %vm4675_vm0 }
 0x1a1   : > { %vm4685_vm15 = vmmov %vm4675_vm0 }
 0x1a3   : > { %3260 = vmatmul.msk.bf16.gmra.mxu2 %vm1966_vm12, %v2391_v49  ;;  %v3378_v49 = vld [vmem:[%s3479_s10 + $0x9c] sm:$0xff] }
 0x1a4   : > { %v2816_v37 = vrot.slane %v3378_v49, 2 }
 0x1a6   : > { %3281 = vmatmul.msk.bf16.vlgmr.msra.gmra.mxu3 %vm1966_vm12, %v2503_v43 }
 0x1a8   : > { %3253 = vmatmul.msk.bf16.vlgmr.msrb.gmra.mxu1 %vm1966_vm12, %v4328_v44  ;;  %v2504_v44 = vrot.slane %v4382_v25, 2  ;;  %v2395_v25 = vsel %vm4673_vm2, %v2392_v28, %v2394_v17  ;;  %vm4687_vm2 = vmmov %vm4675_vm0 }
 0x1aa   : > { %v2505_v27 = vsel %vm4672_vm14, %v2502_v60, %v2504_v44  ;;  %v2619_v60 = vrot.slane %v2617_v19, 2  ;;  %vm4686_vm14 = vmmov %vm4678_vm5 }
 0x1ac   : > { %v2623_v1 = vor.u32 %v2622_v36, %v2619_v60 }
 0x1ae   : > { %v2624_v28 = vsel %vm2580_vm10, %v2614_v12, %v2623_v1 }
 0x1af   : > { %3287 = vmatmul.msk.bf16.vlgmr.msra.gmra.mxu0 %vm1966_vm12, %v2597_v14  ;;  %v2316_v14 = vrot.slane %v2314_v59, 2 }
 0x1b3   : > { %3261 = vmatmul.msk.bf16.gmra.mxu2 %vm1966_vm12, %v2393_v61 }
 0x1b6   : > { %3282 = vmatmul.msk.bf16.gmra.mxu3 %vm1966_vm12, %v2505_v27 }
 0x1b8   : > { %3254 = vmatmul.msk.bf16.gmra.mxu1 %vm1966_vm12, %v4366_v26  ;;  %v2507_v26 = vsel %vm4674_vm7, %v2504_v44, %v2506_v4  ;;  %v2817_v44 = vsel %vm4677_vm9, %v2815_v29, %v2816_v37  ;;  %v2511_v4 = vsel %vm4679_vm3, %v2508_v15, %v2510_v20  ;;  %vm4688_vm7 = vmmov %vm4678_vm5 }
 0x1bf   : > { %3288 = vmatmul.msk.bf16.gmra.mxu0 %vm1966_vm12, %v2606_v7 }
 0x1c3   : > { %3262 = vmatmul.msk.bf16.gmra.mxu2 %vm1966_vm12, %v2395_v25 }
 0x1c6   : > { %v2042_v48 = vpop.f32.mrf.mxu2  ;;  %3283 = vmatmul.msk.bf16.gmra.mxu3 %vm1966_vm12, %v2507_v26  ;;  %v3379_v26 = vld [vmem:[%s3479_s10 + $0xa4] sm:$0xff] }
 0x1c7   : > { %v2818_v12 = vrot.slane %v3379_v26, 2 }
 0x1c8   : > { %3255 = vmatmul.msk.bf16.gmra.mxu1 %vm1966_vm12, %v4387_v34 }
 0x1ce   : > { %v2044_v40 = vpop.f32.mrf.mxu2 }
 0x1cf   : > { %3289 = vmatmul.msk.bf16.gmra.mxu0 %vm1966_vm12, %v2615_v51 }
 0x1d3   : > { %3263 = vmatmul.msk.bf16.gmra.mxu2 %vm1966_vm12, %v2397_v0 }
 0x1d5   : > { %v1995_v34 = vpop.f32.mrf.mxu1 }
 0x1d6   : > { %v2043_v63 = vadd.f32 %v2042_v48, %v1995_v34  ;;  %v2047_v53 = vpop.f32.mrf.mxu2  ;;  %3284 = vmatmul.msk.bf16.gmra.mxu3 %vm1966_vm12, %v2509_v57  ;;  %v2631_v48 = vrot.slane %v2629_v23, 3 }
 0x1d8   : > { %3256 = vmatmul.msk.bf16.gmra.mxu1 %vm1966_vm12, %v4416_v54  ;;  %v2313_v54 = vrot.slane %v2311_v2, 1  ;;  %v2632_v9 = vor.u32 %v2631_v48, %v2628_v21 }
 0x1d9   : > { %v2111_v42 = vpop.f32.mrf.mxu3 }
 0x1da   : > { %v2136_v43 = vadd.f32 %v2111_v42, %v2043_v63  ;;  %v2317_v41 = vor.u32 %v2316_v14, %v2313_v54  ;;  %v2633_v15 = vsel %vm2580_vm10, %v2623_v1, %v2632_v9  ;;  %v3380_v63 = vld [vmem:[%s3479_s10 + $0xac] sm:$0xff]  ;;  %vm4684_vm10 = vmmov %vm4678_vm5 }
 0x1db   : > { %v2225_v56 = vpop.f32.mrf.mxu0  ;;  %v2820_v49 = vrot.slane %v3380_v63, 2 }
 0x1dc   : > { %v4489_v47 = vadd.f32 %v2225_v56, %v2136_v43  ;;  %v2318_v22 = vsel %vm4680_vm11, %v4410_v55, %v2317_v41  ;;  %v2819_v55 = vsel %vm4681_vm4, %v2816_v37, %v2818_v12 }
 0x1dd   : > { %v1997_v6 = vpop.f32.mrf.mxu1  ;;  %v2821_v43 = vsel %vm4683_vm1, %v2818_v12, %v2820_v49 }
 0x1de   : > { %v2045_v52 = vadd.f32 %v2044_v40, %v1997_v6  ;;  %v2049_v39 = vpop.f32.mrf.mxu2  ;;  %v3381_v6 = vld [vmem:[%s3479_s10 + $0xb4] sm:$0xff] }
 0x1df   : > { %3290 = vmatmul.msk.bf16.gmra.mxu0 %vm1966_vm12, %v2624_v28 }
 0x1e1   : > { %v2113_v61 = vpop.f32.mrf.mxu3 }
 0x1e2   : > { %v2137_v13 = vadd.f32 %v2113_v61, %v2045_v52 }
 0x1e3   : > { %v2227_v27 = vpop.f32.mrf.mxu0  ;;  %3318 = vmatmul.msk.bf16.vlgmr.msra.gmra.mxu2 %vm4678_vm5, %v2817_v44 }
 0x1e4   : > { %v4497_v17 = vadd.f32 %v2227_v27, %v2137_v13  ;;  %v2785_v27 = vld [vmem:[%s3479_s10 + $0xbc] sm:$0x3] }
 0x1e5   : > { %v2000_v7 = vpop.f32.mrf.mxu1  ;;  %v2808_v62 = vunpack.c.l.b16 %v2785_v27 }
 0x1e6   : > { %v2048_v25 = vadd.f32 %v2047_v53, %v2000_v7  ;;  %v2052_v8 = vpop.f32.mrf.mxu2  ;;  %3285 = vmatmul.msk.bf16.gmra.mxu3 %vm1966_vm12, %v2511_v4 }
 0x1e8   : > { %3257 = vmatmul.msk.bf16.gmra.mxu1 %vm1966_vm12, %v2318_v22 }
 0x1e9   : > { %v2116_v38 = vpop.f32.mrf.mxu3 }
 0x1ea   : > { %v2138_v18 = vadd.f32 %v2116_v38, %v2048_v25 }
 0x1eb   : > { %v2230_v50 = vpop.f32.mrf.mxu0 }
 0x1ec   : > { %v4505_v58 = vadd.f32 %v2230_v50, %v2138_v18 }
 0x1ed   : > { %v2002_v40 = vpop.f32.mrf.mxu1 }
 0x1ee   : > { %v2050_v16 = vadd.f32 %v2049_v39, %v2002_v40  ;;  %v2054_v51 = vpop.f32.mrf.mxu2  ;;  %v2822_v39 = vrot.slane %v3381_v6, 2 }
 0x1ef   : > { %3291 = vmatmul.msk.bf16.gmra.mxu0 %vm1966_vm12, %v2633_v15 }
 0x1f0   : > { %v2823_v20 = vsel %vm4685_vm15, %v2820_v49, %v2822_v39 }
 0x1f1   : > { %v2118_v0 = vpop.f32.mrf.mxu3 }
 0x1f2   : > { %v2139_v19 = vadd.f32 %v2118_v0, %v2050_v16 }
 0x1f3   : > { %v2232_v32 = vpop.f32.mrf.mxu0  ;;  %3319 = vmatmul.msk.bf16.gmra.mxu2 %vm4682_vm6, %v2819_v55 }
 0x1f4   : > { %v4511_v34 = vadd.f32 %v2232_v32, %v2139_v19 }
 0x1f5   : > { %v2005_v57 = vpop.f32.mrf.mxu1 }
 0x1f6   : > { %v2053_v46 = vadd.f32 %v2052_v8, %v2005_v57  ;;  %v2057_v3 = vpop.f32.mrf.mxu2  ;;  %v2814_v8 = vpack.c.b16 %v2808_v62, %v2808_v62 }
 0x1f8   : > { %3293 = vmatmul.msk.bf16.vlgmr.msra.gmra.mxu1 %vm1966_vm12, %v4391_v11  ;;  %v2824_v48 = vrot.slane %v2814_v8, 2  ;;  %v4557_v8 = vld [vmem:[%s4608_s4] ss:$0 sm:$0xff] }
 0x1f9   : > { %v2121_v53 = vpop.f32.mrf.mxu3 }
 0x1fa   : > { %v2140_v10 = vadd.f32 %v2121_v53, %v2053_v46  ;;  %v2825_v12 = vsel %vm4687_vm2, %v2822_v39, %v2824_v48 }
 0x1fb   : > { %v2235_v60 = vpop.f32.mrf.mxu0 }
 0x1fc   : > { %v4516_v36 = vadd.f32 %v2235_v60, %v2140_v10 }
 0x1fd   : > { %v2007_v33 = vpop.f32.mrf.mxu1 }
 0x1fe   : > { %v2055_v42 = vadd.f32 %v2054_v51, %v2007_v33  ;;  %v2059_v35 = vpop.f32.mrf.mxu2 }
 0x201   : > { %v2123_v56 = vpop.f32.mrf.mxu3 }
 0x202   : > { %v2141_v1 = vadd.f32 %v2123_v56, %v2055_v42 }
 0x203   : > { %v2237_v2 = vpop.f32.mrf.mxu0  ;;  %3320 = vmatmul.msk.bf16.gmra.mxu2 %vm4684_vm10, %v2821_v43 }
 0x204   : > { %v4520_v59 = vadd.f32 %v2237_v2, %v2141_v1 }
 0x205   : > { %v2010_v11 = vpop.f32.mrf.mxu1 }
 0x206   : > { %v2058_v29 = vadd.f32 %v2057_v3, %v2010_v11  ;;  %v2062_v37 = vpop.f32.mrf.mxu2 }
 0x208   : > { %3294 = vmatmul.msk.bf16.gmra.mxu1 %vm1966_vm12, %v4402_v30 }
 0x209   : > { %v2126_v31 = vpop.f32.mrf.mxu3 }
 0x20a   : > { %v2142_v52 = vadd.f32 %v2126_v31, %v2058_v29 }
 0x20c   : > { %v2240_v28 = vpop.f32.mrf.mxu0 }
 0x20d   : > { %v2012_v54 = vpop.f32.mrf.mxu1  ;;  %v2256_v14 = vadd.f32 %v2240_v28, %v2142_v52 }
 0x20e   : > { %v2060_v44 = vadd.f32 %v2059_v35, %v2012_v54  ;;  %v2064_v61 = vpop.f32.mrf.mxu2 }
 0x211   : > { %v2128_v13 = vpop.f32.mrf.mxu3 }
 0x212   : > { %v2143_v41 = vadd.f32 %v2128_v13, %v2060_v44 }
 0x213   : > { %3321 = vmatmul.msk.bf16.gmra.mxu2 %vm4686_vm14, %v2823_v20 }
 0x214   : > { %v2242_v23 = vpop.f32.mrf.mxu0 }
 0x215   : > { %v2015_v7 = vpop.f32.mrf.mxu1  ;;  %v2257_v30 = vadd.f32 %v2242_v23, %v2143_v41 }
 0x216   : > { %v2063_v4 = vadd.f32 %v2062_v37, %v2015_v7  ;;  %v2425_v25 = vpop.f32.mrf.mxu2 }
 0x218   : > { %3295 = vmatmul.msk.bf16.gmra.mxu1 %vm1966_vm12, %v4429_v45 }
 0x219   : > { %v2131_v22 = vpop.f32.mrf.mxu3 }
 0x21a   : > { %v2144_v21 = vadd.f32 %v2131_v22, %v2063_v4 }
 0x21c   : > { %v2245_v26 = vpop.f32.mrf.mxu0 }
 0x21d   : > { %v2017_v38 = vpop.f32.mrf.mxu1  ;;  %v2258_v18 = vadd.f32 %v2245_v26, %v2144_v21 }
 0x21e   : > { %v2065_v50 = vadd.f32 %v2064_v61, %v2017_v38  ;;  %v2427_v9 = vpop.f32.mrf.mxu2 }
 0x221   : > { %v2133_v40 = vpop.f32.mrf.mxu3 }
 0x222   : > { %v2145_v16 = vadd.f32 %v2133_v40, %v2065_v50 }
 0x223   : > { %3322 = vmatmul.msk.bf16.gmra.mxu2 %vm4688_vm7, %v2825_v12 }
 0x224   : > { %v2247_v51 = vpop.f32.mrf.mxu0 }
 0x225   : > { %v2346_v15 = vpop.f32.mrf.mxu1  ;;  %v2259_v55 = vadd.f32 %v2247_v51, %v2145_v16 }
 0x226   : > { %v2371_v45 = vadd.f32 %v2346_v15, %v4489_v47  ;;  %v2430_v0 = vpop.f32.mrf.mxu2 }
 0x228   : > { %3296 = vmatmul.msk.bf16.gmra.mxu1 %vm1966_vm12, %v4446_v24  ;;  %v2450_v19 = vadd.f32 %v2425_v25, %v2371_v45 }
 0x22c   : > { %v2661_v39 = vpop.f32.mrf.mxu0 }
 0x22d   : > { %v2348_v32 = vpop.f32.mrf.mxu1 }
 0x22e   : > { %v2372_v57 = vadd.f32 %v2348_v32, %v4497_v17  ;;  %v2432_v46 = vpop.f32.mrf.mxu2 }
 0x230   : > { %v2451_v3 = vadd.f32 %v2427_v9, %v2372_v57 }
 0x234   : > { %v2663_v20 = vpop.f32.mrf.mxu0 }
 0x235   : > { %v2351_v63 = vpop.f32.mrf.mxu1 }
 0x236   : > { %v2373_v53 = vadd.f32 %v2351_v63, %v4505_v58  ;;  %v2435_v10 = vpop.f32.mrf.mxu2 }
 0x238   : > { %3297 = vmatmul.msk.bf16.gmra.mxu1 %vm1966_vm12, %v4449_v5  ;;  %v2452_v60 = vadd.f32 %v2430_v0, %v2373_v53 }
 0x23c   : > { %v2666_v7 = vpop.f32.mrf.mxu0 }
 0x23d   : > { %v2353_v49 = vpop.f32.mrf.mxu1 }
 0x23e   : > { %v2374_v47 = vadd.f32 %v2353_v49, %v4511_v34  ;;  %v2437_v33 = vpop.f32.mrf.mxu2  ;;  %v2539_v34 = vpop.f32.mrf.mxu3 }
 0x23f   : > { %v2564_v62 = vadd.f32 %v2539_v34, %v2450_v19 }
 0x240   : > { %v2453_v42 = vadd.f32 %v2432_v46, %v2374_v47 }
 0x244   : > { %v2668_v9 = vpop.f32.mrf.mxu0 }
 0x245   : > { %v2356_v24 = vpop.f32.mrf.mxu1 }
 0x246   : > { %v2375_v35 = vadd.f32 %v2356_v24, %v4516_v36  ;;  %v2440_v43 = vpop.f32.mrf.mxu2  ;;  %v2541_v28 = vpop.f32.mrf.mxu3 }
 0x247   : > { %v2565_v22 = vadd.f32 %v2541_v28, %v2451_v3 }
 0x248   : > { %v4541_v17 = vadd.f32 %v2435_v10, %v2375_v35 }
 0x24c   : > { %v2671_v46 = vpop.f32.mrf.mxu0 }
 0x24d   : > { %v2358_v56 = vpop.f32.mrf.mxu1 }
 0x24e   : > { %v2376_v1 = vadd.f32 %v2358_v56, %v4520_v59  ;;  %v2442_v58 = vpop.f32.mrf.mxu2 }
 0x250   : > { %v4544_v2 = vadd.f32 %v2437_v33, %v2376_v1 }
 0x254   : > { %v2673_v56 = vpop.f32.mrf.mxu0 }
 0x255   : > { %v2361_v11 = vpop.f32.mrf.mxu1 }
 0x256   : > { %v2377_v5 = vadd.f32 %v2361_v11, %v2256_v14  ;;  %v2445_v29 = vpop.f32.mrf.mxu2  ;;  %v2544_v14 = vpop.f32.mrf.mxu3 }
 0x257   : > { %v2566_v16 = vadd.f32 %v2544_v14, %v2452_v60 }
 0x258   : > { %v4546_v37 = vadd.f32 %v2440_v43, %v2377_v5 }
 0x259   : > { %v2688_v0 = vadd.f32 %v2666_v7, %v2566_v16 }
 0x25d   : > { %v2363_v6 = vpop.f32.mrf.mxu1 }
 0x25e   : > { %v2378_v31 = vadd.f32 %v2363_v6, %v2257_v30  ;;  %v2447_v52 = vpop.f32.mrf.mxu2  ;;  %v2686_v30 = vadd.f32 %v2661_v39, %v2564_v62  ;;  %v2546_v21 = vpop.f32.mrf.mxu3 }
 0x25f   : > { %v2567_v3 = vadd.f32 %v2546_v21, %v2453_v42 }
 0x260   : > { %v4548_v36 = vadd.f32 %v2442_v58, %v2378_v31 }
 0x261   : > { %v2689_v10 = vadd.f32 %v2668_v9, %v2567_v3 }
 0x265   : > { %v2366_v54 = vpop.f32.mrf.mxu1 }
 0x266   : > { %v2379_v44 = vadd.f32 %v2366_v54, %v2258_v18  ;;  %v2853_v59 = vpop.f32.mrf.mxu2  ;;  %v2687_v18 = vadd.f32 %v2663_v20, %v2565_v22  ;;  %v2549_v15 = vpop.f32.mrf.mxu3 }
 0x267   : > { %v2568_v35 = vadd.f32 %v2549_v15, %v4541_v17  ;;  %v2676_v17 = vpop.f32.mrf.mxu0 }
 0x268   : > { %v4550_v61 = vadd.f32 %v2445_v29, %v2379_v44 }
 0x269   : > { %v2690_v42 = vadd.f32 %v2671_v46, %v2568_v35 }
 0x26d   : > { %v2368_v13 = vpop.f32.mrf.mxu1 }
 0x26e   : > { %v2380_v27 = vadd.f32 %v2368_v13, %v2259_v55  ;;  %v2855_v41 = vpop.f32.mrf.mxu2  ;;  %v2551_v60 = vpop.f32.mrf.mxu3 }
 0x26f   : > { %v2569_v6 = vadd.f32 %v2551_v60, %v4544_v2  ;;  %v2678_v62 = vpop.f32.mrf.mxu0 }
 0x270   : > { %v4552_v23 = vadd.f32 %v2447_v52, %v2380_v27 }
 0x271   : > { %v2691_v39 = vadd.f32 %v2673_v56, %v2569_v6 }
 0x275   : > { %v2740_v4 = vpop.f32.mrf.mxu1 }
 0x276   : > { %v2765_v25 = vadd.f32 %v2740_v4, %v2686_v30  ;;  %v2858_v26 = vpop.f32.mrf.mxu2  ;;  %v2554_v5 = vpop.f32.mrf.mxu3 }
 0x278   : > { %v2878_v48 = vadd.f32 %v2853_v59, %v2765_v25  ;;  %v2570_v59 = vadd.f32 %v2554_v5, %v4546_v37 }
 0x27a   : > { %v2892_v38 = vadd.f32 %v4557_v8, %v2878_v48  ;;  %v2692_v2 = vadd.f32 %v2676_v17, %v2570_v59 }
 0x27c   : > { %v2902_v50 = vpack.c.bf16 %v2892_v38, %v2892_v38 }
 0x27d   : > { %v2742_v12 = vpop.f32.mrf.mxu1 }
 0x27e   : > { %2912 = vst.msk [vmem:[%s4564_s28] sm:$0xf] %vm1723_vm8, %v2902_v50  ;;  %v2766_v40 = vadd.f32 %v2742_v12, %v2687_v18  ;;  %v2860_v45 = vpop.f32.mrf.mxu2  ;;  %v2556_v20 = vpop.f32.mrf.mxu3 }
 0x27f   : > { %v2571_v4 = vadd.f32 %v2556_v20, %v4548_v36  ;;  %v2681_v50 = vpop.f32.mrf.mxu0 }
 0x280   : > { %v2879_v51 = vadd.f32 %v2855_v41, %v2766_v40 }
 0x281   : > { %v2693_v48 = vadd.f32 %v2678_v62, %v2571_v4 }
 0x282   : > { %v2893_v55 = vadd.f32 %v4557_v8, %v2879_v51 }
 0x284   : > { %v2903_v19 = vpack.c.bf16 %v2893_v55, %v2893_v55 }
 0x285   : > { %v2745_v32 = vpop.f32.mrf.mxu1 }
 0x286   : > { %2913 = vst.msk [vmem:[%s4564_s28 + $0x4] sm:$0xf] %vm1723_vm8, %v2903_v19  ;;  %v2767_v57 = vadd.f32 %v2745_v32, %v2688_v0  ;;  %v2863_v33 = vpop.f32.mrf.mxu2  ;;  %v2559_v22 = vpop.f32.mrf.mxu3 }
 0x287   : > { %v2572_v9 = vadd.f32 %v2559_v22, %v4550_v61  ;;  %v2683_v32 = vpop.f32.mrf.mxu0 }
 0x288   : > { %v2880_v63 = vadd.f32 %v2858_v26, %v2767_v57 }
 0x289   : > { %v2694_v36 = vadd.f32 %v2681_v50, %v2572_v9 }
 0x28a   : > { %v2894_v53 = vadd.f32 %v4557_v8, %v2880_v63 }
 0x28c   : > { %v2904_v49 = vpack.c.bf16 %v2894_v53, %v2894_v53 }
 0x28d   : > { %v2747_v47 = vpop.f32.mrf.mxu1 }
 0x28e   : > { %2914 = vst.msk [vmem:[%s4564_s28 + $0x8] sm:$0xf] %vm1723_vm8, %v2904_v49  ;;  %v2768_v24 = vadd.f32 %v2747_v47, %v2689_v10  ;;  %v2865_v34 = vpop.f32.mrf.mxu2  ;;  %v2561_v16 = vpop.f32.mrf.mxu3 }
 0x28f   : > { %v2573_v0 = vadd.f32 %v2561_v16, %v4552_v23 }
 0x290   : > { %v2881_v43 = vadd.f32 %v2860_v45, %v2768_v24 }
 0x291   : > { %v2695_v61 = vadd.f32 %v2683_v32, %v2573_v0 }
 0x292   : > { %v2895_v1 = vadd.f32 %v4557_v8, %v2881_v43 }
 0x294   : > { %v2905_v58 = vpack.c.bf16 %v2895_v1, %v2895_v1 }
 0x295   : > { %v2750_v11 = vpop.f32.mrf.mxu1 }
 0x296   : > { %2915 = vst.msk [vmem:[%s4564_s28 + $0xc] sm:$0xf] %vm1723_vm8, %v2905_v58  ;;  %v2769_v29 = vadd.f32 %v2750_v11, %v2690_v42  ;;  %v2868_v14 = vpop.f32.mrf.mxu2 }
 0x298   : > { %v2882_v31 = vadd.f32 %v2863_v33, %v2769_v29 }
 0x29a   : > { %v2896_v52 = vadd.f32 %v4557_v8, %v2882_v31 }
 0x29c   : > { %v2906_v28 = vpack.c.bf16 %v2896_v52, %v2896_v52 }
 0x29d   : > { %v2752_v54 = vpop.f32.mrf.mxu1 }
 0x29e   : > { %2916 = vst.msk [vmem:[%s4564_s28 + $0x10] sm:$0xf] %vm1723_vm8, %v2906_v28  ;;  %v2770_v44 = vadd.f32 %v2752_v54, %v2691_v39  ;;  %v2870_v37 = vpop.f32.mrf.mxu2 }
 0x2a0   : > { %v2883_v13 = vadd.f32 %v2865_v34, %v2770_v44 }
 0x2a2   : > { %v2897_v27 = vadd.f32 %v4557_v8, %v2883_v13 }
 0x2a4   : > { %v2907_v41 = vpack.c.bf16 %v2897_v27, %v2897_v27 }
 0x2a5   : > { %v2755_v7 = vpop.f32.mrf.mxu1 }
 0x2a6   : > { %2917 = vst.msk [vmem:[%s4564_s28 + $0x14] sm:$0xf] %vm1723_vm8, %v2907_v41  ;;  %v2771_v30 = vadd.f32 %v2755_v7, %v2692_v2  ;;  %v2873_v15 = vpop.f32.mrf.mxu2 }
 0x2a8   : > { %v2884_v25 = vadd.f32 %v2868_v14, %v2771_v30 }
 0x2aa   : > { %v2898_v21 = vadd.f32 %v4557_v8, %v2884_v25 }
 0x2ac   : > { %v2908_v26 = vpack.c.bf16 %v2898_v21, %v2898_v21 }
 0x2ad   : > { %v2757_v38 = vpop.f32.mrf.mxu1 }
 0x2ae   : > { %2918 = vst.msk [vmem:[%s4564_s28 + $0x18] sm:$0xf] %vm1723_vm8, %v2908_v26  ;;  %v2772_v18 = vadd.f32 %v2757_v38, %v2693_v48  ;;  %v2875_v53 = vpop.f32.mrf.mxu2 }
 0x2b0   : > { %v2885_v12 = vadd.f32 %v2870_v37, %v2772_v18 }
 0x2b2   : > { %v2899_v40 = vadd.f32 %v4557_v8, %v2885_v12 }
 0x2b4   : > { %v2909_v51 = vpack.c.bf16 %v2899_v40, %v2899_v40 }
 0x2b5   : > { %v2760_v55 = vpop.f32.mrf.mxu1 }
 0x2b6   : > { %2919 = vst.msk [vmem:[%s4564_s28 + $0x1c] sm:$0xf] %vm1723_vm8, %v2909_v51  ;;  %v2773_v45 = vadd.f32 %v2760_v55, %v2694_v36 }
 0x2b8   : > { %v2886_v19 = vadd.f32 %v2873_v15, %v2773_v45 }
 0x2ba   : > { %v2900_v57 = vadd.f32 %v4557_v8, %v2886_v19 }
 0x2bc   : > { %v2910_v46 = vpack.c.bf16 %v2900_v57, %v2900_v57 }
 0x2bd   : > { %v2762_v3 = vpop.f32.mrf.mxu1 }
 0x2be   : > { %2920 = vst.msk [vmem:[%s4564_s28 + $0x20] sm:$0xf] %vm1723_vm8, %v2910_v46  ;;  %v2774_v63 = vadd.f32 %v2762_v3, %v2695_v61 }
 0x2c0   : > { %v2887_v10 = vadd.f32 %v2875_v53, %v2774_v63 }
 0x2c2   : > { %v2901_v60 = vadd.f32 %v4557_v8, %v2887_v10 }
 0x2c4   : > { %v2911_v49 = vpack.c.bf16 %v2901_v60, %v2901_v60 }
 0x2c6   : > { %2921 = vst.msk [vmem:[%s4564_s28 + $0x24] sm:$0xf] %vm1723_vm8, %v2911_v49 }
 0x2c7 PF: > { %s16_s21 = sadd.s32 1, %s3411_s21  }
 0x2c8   : > { %p13_p4 = scmp.ge.s32.totalorder %s16_s21, 4  }
 0x2ca   :  { %15 = sbr.rel (!%p13_p4) target bundleno = 1 (0x1), region = 90 }

</bundles_post_ra>
